<compile_context>
chip_gen: v5e
topology: v5e:2x2
jax: 0.10.0
libtpu: 0.0.40
codegen_flags: <defaults>
</compile_context>

<pallas_src>
import functools
import numpy as np
import jax
import jax.numpy as jnp
from jax.experimental import pallas as pl
from jax.experimental.pallas import tpu as pltpu

EPS = 1e-5


# ----------------------------- fused Pallas kernel -----------------------------

def _fused_kernel(x_ref, wb_ref, out_ref, *, lay, H, W, Ho, Wo, Cin, mid,
                  stride1, decimate):
    """One batch element per grid step. Activations are carried in the flattened
    lane-dense layout (rows, width*channels), channels fastest within a pixel.
    The whole block (3x dw3x3 + 3x 1x1 [+ proj branch] + BN + ReLU + channel
    shuffle/split + output concat) runs in VMEM; nothing round-trips to HBM."""
    f32 = jnp.float32
    x = x_ref[0].astype(f32)                                    # (H, W*Cx)

    def piece(name):
        r0, nr, nc = lay[name]                                  # static offsets
        return wb_ref[r0:r0 + nr, 0:nc]

    def dw3x3(v, name, Wc, C):
        """Depthwise 3x3 conv (pad=1, BN folded) on the flattened (rows, Wc*C) layout.
        Column shifts are built ONCE per direction; the wrapped lanes of jnp.roll are
        cancelled by edge-zeroed tap weights, so the 9 taps only need cheap
        lane-aligned row slices (no per-tap misaligned padded slices)."""
        WC = Wc * C
        taps = piece(name)                                      # (9, WC)
        bias = piece(name + "_b")                               # (1, WC)
        R = v.shape[0]
        shifted = (jnp.roll(v, C, axis=1),                      # data from pixel w-1
                   v,                                           # centre
                   jnp.roll(v, -C, axis=1))                     # data from pixel w+1
        zrow = jnp.zeros((1, WC), f32)
        acc = jnp.zeros((R, WC), f32)
        for dj in range(3):
            vp = jnp.concatenate([zrow, shifted[dj], zrow], axis=0)   # (R+2, WC)
            for di in range(3):
                k = 3 * di + dj
                acc = acc + vp[di:di + R, :] * taps[k:k + 1, :]
        return acc + bias

    def pw_bn_relu(v, name):
        """1x1 conv + BN + ReLU as a single MXU matmul (stride-2 column decimation and
        the output-concat placement are pre-folded into the weight/bias)."""
        y = jnp.dot(v, piece(name), preferred_element_type=f32) + piece(name + "_b")
        return jnp.maximum(y, 0.0)

    def dec_rows(v):                                            # stride-2 row selection
        if decimate:
            return jnp.dot(piece("dec_r"), v, preferred_element_type=f32)
        return v
    # TODO(synk): compute only the even output rows inside dw3x3 (sublane-strided tap
    #             slices) and drop dec_r entirely once that path is exercised.

    # ---------------- main branch ----------------
    if stride1:   # in-kernel channel_shuffle: odd channels -> main branch input
        xm = jnp.dot(x, piece("shuf_main"), preferred_element_type=f32)   # (H, W*Cin)
    else:
        xm = x
    y = dec_rows(dw3x3(xm, "dw1", W, Cin))                      # rows H->Ho, cols W*Cin
    y = pw_bn_relu(y, "pw1")                                    # (Ho, Wo*mid)
    y = pw_bn_relu(dw3x3(y, "dw2", Wo, mid), "pw2")             # (Ho, Wo*mid)
    y = pw_bn_relu(dw3x3(y, "dw3", Wo, mid), "pw3")             # (Ho, Wo*oup) main slots

    # ---------------- proj branch / shuffled pass-through ----------------
    if stride1:   # even channels pass straight through into the proj output slots
        proj = jnp.dot(x, piece("place_proj"), preferred_element_type=f32)
    else:
        p = dec_rows(dw3x3(x, "dwp", W, Cin))
        proj = pw_bn_relu(p, "pwp")                             # (Ho, Wo*oup) proj slots

    out_ref[0] = (proj + y).astype(out_ref.dtype)               # fused channel concat


# ----------------------------- weight preparation (hoisted) -----------------------------

def _fold_bn(bn):
    mean, var = bn
    s = jax.lax.rsqrt(var + EPS)
    return s, -mean * s


def _dw_taps(w, bn, Wc):
    """(3,3,C) depthwise weights -> (9, Wc*C) width-tiled, BN-scaled taps with the
    left/right image-boundary columns zeroed (replaces physical column zero-padding),
    plus the folded-BN bias tiled to (1, Wc*C)."""
    s, b = _fold_bn(bn)
    C = int(w.shape[-1])
    taps = jnp.tile((w * s[None, None, :]).reshape(9, C), (1, Wc))
    taps = taps.at[0::3, 0:C].set(0.0)                     # dj==0: no left neighbour at w==0
    taps = taps.at[2::3, (Wc - 1) * C:Wc * C].set(0.0)     # dj==2: no right neighbour at w==Wc-1
    return taps, jnp.tile(b, Wc)[None, :]


def _pw_mat(w, bn, Wsp):
    """(Ci,Co) 1x1 conv + BN -> block-diagonal (Wsp*Ci, Wsp*Co) matmul weight + bias."""
    s, b = _fold_bn(bn)
    big = jnp.kron(jnp.eye(Wsp, dtype=jnp.float32), w * s[None, :])
    return big, jnp.tile(b, Wsp)[None, :]


def _dec_rows_mat(H, Ho):
    return jnp.zeros((Ho, H), jnp.float32).at[jnp.arange(Ho), 2 * jnp.arange(Ho)].set(1.0)


def _dec_cols_mat(W, C, Wo):
    q = jnp.arange(Wo * C)
    p = 2 * (q // C) * C + (q % C)
    return jnp.zeros((W * C, Wo * C), jnp.float32).at[p, q].set(1.0)


def _place(Wsp, nch, n_out, off):
    """0/1 matrix scattering a (rows, Wsp*nch) branch output into output-channel slots
    [off, off+nch) of the fused (rows, Wsp*n_out) layout."""
    t = jnp.arange(Wsp * nch)
    cols = (t // nch) * n_out + off + (t % nch)
    return jnp.zeros((Wsp * nch, Wsp * n_out), jnp.float32).at[t, cols].set(1.0)


def _shuffle_main(W, Ctot, Cin):
    """Select the odd input channels (channel_shuffle second half) per pixel."""
    q = jnp.arange(W * Cin)
    rows = (q // Cin) * Ctot + 2 * (q % Cin) + 1
    return jnp.zeros((W * Ctot, W * Cin), jnp.float32).at[rows, q].set(1.0)


def _shuffle_proj_place(W, Ctot, n_proj, n_out):
    """Select the even input channels and place them in the proj slots of the output."""
    t = jnp.arange(W * n_proj)
    rows = (t // n_proj) * Ctot + 2 * (t % n_proj)
    cols = (t // n_proj) * n_out + (t % n_proj)
    return jnp.zeros((W * Ctot, W * n_out), jnp.float32).at[rows, cols].set(1.0)


def _pack(pieces):
    """Concatenate all prepared weights into ONE lane-aligned VMEM blob (single DMA);
    returns the blob plus a {name: (row0, rows, cols)} static-offset layout."""
    width = max(int(a.shape[1]) for _, a in pieces)
    width = ((width + 127) // 128) * 128
    lay, rows, r0 = {}, [], 0
    for name, a in pieces:
        a = jnp.asarray(a, jnp.float32)
        nr, nc = int(a.shape[0]), int(a.shape[1])
        nr_pad = ((nr + 7) // 8) * 8                      # 8-row (sublane) alignment
        rows.append(jnp.pad(a, ((0, nr_pad - nr), (0, width - nc))))
        lay[name] = (r0, nr, nc)
        r0 += nr_pad
    return jnp.concatenate(rows, axis=0), lay


def prepare_weights(params, *, H, W, stride, iteration):
    """Fold BN, pre-expand every conv for the flattened lane-dense layout, and fold the
    channel shuffle / stride-2 column decimation / output concat into the 1x1 weights.
    Runs ONCE per module (hoisted out of the per-forward path)."""
    pm = params["main"]
    inp = int(pm["dw1"].shape[-1])
    mid = int(pm["pw1"].shape[1])
    outputs = int(pm["pw3"].shape[1])
    n_out = inp + outputs                                 # == oup
    stride1 = (stride == 1)
    s_main = 1 if (stride == 2 and iteration == 0) else stride
    decimate = (s_main == 2)
    Ho, Wo = (H // 2, W // 2) if decimate else (H, W)
    Ctot = 2 * inp if stride1 else inp                    # channels of the kernel's x input

    pieces = []
    add = lambda n, a: pieces.append((n, a))

    # depthwise 3x3 convs (edge-masked taps + folded-BN bias)
    t, b = _dw_taps(pm["dw1"], pm["bn1"], W);  add("dw1", t); add("dw1_b", b)
    t, b = _dw_taps(pm["dw2"], pm["bn3"], Wo); add("dw2", t); add("dw2_b", b)
    t, b = _dw_taps(pm["dw3"], pm["bn5"], Wo); add("dw3", t); add("dw3_b", b)

    # 1x1 convs as block-diagonal matmuls; fold column decimation into pw1 and the
    # output-concat placement into pw3 / pwp.
    dec_c = _dec_cols_mat(W, inp, Wo) if decimate else None
    w1, b1 = _pw_mat(pm["pw1"], pm["bn2"], Wo)
    if decimate:
        w1 = dec_c @ w1
    add("pw1", w1); add("pw1_b", b1)
    w2, b2 = _pw_mat(pm["pw2"], pm["bn4"], Wo); add("pw2", w2); add("pw2_b", b2)
    w3, b3 = _pw_mat(pm["pw3"], pm["bn6"], Wo)
    P_main = _place(Wo, outputs, n_out, inp)
    add("pw3", w3 @ P_main); add("pw3_b", b3 @ P_main)

    if decimate:
        add("dec_r", _dec_rows_mat(H, Ho))

    if stride1:
        add("shuf_main", _shuffle_main(W, Ctot, inp))
        add("place_proj", _shuffle_proj_place(W, Ctot, inp, n_out))
    else:
        pp = params["proj"]
        t, b = _dw_taps(pp["dw"], pp["bn1"], W); add("dwp", t); add("dwp_b", b)
        wp, bp = _pw_mat(pp["pw"], pp["bn2"], Wo)
        if decimate:
            wp = dec_c @ wp
        P_proj = _place(Wo, inp, n_out, 0)
        add("pwp", wp @ P_proj); add("pwp_b", bp @ P_proj)

    blob, lay = _pack(pieces)
    meta = dict(H=H, W=W, Ho=Ho, Wo=Wo, Cin=inp, mid=mid, n_out_ch=n_out,
                Cx=Ctot, stride1=stride1, decimate=decimate)
    return blob, lay, meta


# ----------------------------- pallas_call wrapper -----------------------------

def _fused_call(x_flat, blob, lay, meta, *, B):
    H, W, Ho, Wo = meta["H"], meta["W"], meta["Ho"], meta["Wo"]
    Cx, n_out = meta["Cx"], meta["n_out_ch"]
    kernel = functools.partial(
        _fused_kernel, lay=lay, H=H, W=W, Ho=Ho, Wo=Wo, Cin=meta["Cin"],
        mid=meta["mid"], stride1=meta["stride1"], decimate=meta["decimate"])
    RB, WB = blob.shape
    return pl.pallas_call(
        kernel,
        out_shape=jax.ShapeDtypeStruct((B, Ho, Wo * n_out), jnp.float32),
        grid=(B,),
        in_specs=[pl.BlockSpec((1, H, W * Cx), lambda b: (b, 0, 0)),
                  pl.BlockSpec((RB, WB), lambda b: (0, 0))],    # weight blob: resident
        out_specs=pl.BlockSpec((1, Ho, Wo * n_out), lambda b: (b, 0, 0)),
        compiler_params=pltpu.CompilerParams(
            dimension_semantics=("parallel",),                  # feeds both TCs on v7x
            vmem_limit_bytes=32 * 1024 * 1024),
    )(x_flat, blob)


def shuffle_xception_forward(old_x_nchw, blob, lay, meta):
    """Pallas implementation of Shuffle_Xception.forward. I/O is NCHW (PyTorch layout).
    All shuffle / branch / concat work happens inside the fused kernel."""
    x_all = jnp.transpose(old_x_nchw, (0, 2, 3, 1))             # NCHW -> NHWC
    B, H, W, Cx = x_all.shape
    assert (H, W, Cx) == (meta["H"], meta["W"], meta["Cx"])
    x_flat = x_all.reshape(B, H, W * Cx)                        # lane-dense, ch fastest
    out = _fused_call(x_flat, blob, lay, meta, B=B)             # (B, Ho, Wo*oup)
    out = out.reshape(B, meta["Ho"], meta["Wo"], meta["n_out_ch"])
    return jnp.transpose(out, (0, 3, 1, 2))                     # NHWC -> NCHW


# ----------------------------- parameter init -----------------------------

def make_params(key, inp, oup, mid, stride):
    outputs = oup - inp
    ks = iter(jax.random.split(key, 48))

    def dw(c):
        return jax.random.normal(next(ks), (3, 3, c), jnp.float32) * 0.2

    def pw(ci, co):
        return jax.random.normal(next(ks), (ci, co), jnp.float32) * 0.2

    def bn(c):
        mean = jax.random.normal(next(ks), (c,), jnp.float32) * 0.1
        var = jax.random.uniform(next(ks), (c,), jnp.float32, minval=0.5, maxval=1.5)
        return (mean, var)

    main = dict(
        dw1=dw(inp), bn1=bn(inp),
        pw1=pw(inp, mid), bn2=bn(mid),
        dw2=dw(mid), bn3=bn(mid),
        pw2=pw(mid, mid), bn4=bn(mid),
        dw3=dw(mid), bn5=bn(mid),
        pw3=pw(mid, outputs), bn6=bn(outputs),
    )
    params = {"main": main}
    if stride == 2:
        params["proj"] = dict(dw=dw(inp), bn1=bn(inp), pw=pw(inp, inp), bn2=bn(inp))
    return params


# ----------------------------- pure-JAX reference -----------------------------

def _ref_dw_bn(x, w, bn, stride):
    mean, var = bn
    C = x.shape[-1]
    y = jax.lax.conv_general_dilated(
        x, w.reshape(3, 3, 1, C), (stride, stride), ((1, 1), (1, 1)),
        dimension_numbers=("NHWC", "HWIO", "NHWC"), feature_group_count=C,
        precision=jax.lax.Precision.HIGHEST)
    return (y - mean) / jnp.sqrt(var + EPS)


def _ref_pw_bn_relu(x, w, bn):
    mean, var = bn
    y = jnp.einsum("bhwc,cd->bhwd", x, w, precision=jax.lax.Precision.HIGHEST)
    y = (y - mean) / jnp.sqrt(var + EPS)
    return jnp.maximum(y, 0.0)


def reference_forward(old_x_nchw, params, *, stride, iteration):
    x_all = jnp.transpose(old_x_nchw, (0, 2, 3, 1))
    if stride == 1:
        x_proj, x = x_all[..., 0::2], x_all[..., 1::2]
    else:
        x_proj, x = x_all, x_all
    pm = params["main"]
    s_main = 1 if (stride == 2 and iteration == 0) else stride
    y = _ref_dw_bn(x, pm["dw1"], pm["bn1"], s_main)
    y = _ref_pw_bn_relu(y, pm["pw1"], pm["bn2"])
    y = _ref_dw_bn(y, pm["dw2"], pm["bn3"], 1)
    y = _ref_pw_bn_relu(y, pm["pw2"], pm["bn4"])
    y = _ref_dw_bn(y, pm["dw3"], pm["bn5"], 1)
    y = _ref_pw_bn_relu(y, pm["pw3"], pm["bn6"])
    if stride == 2:
        pp = params["proj"]
        s_proj = 1 if iteration == 0 else stride
        p = _ref_dw_bn(x_proj, pp["dw"], pp["bn1"], s_proj)
        p = _ref_pw_bn_relu(p, pp["pw"], pp["bn2"])
        x_proj = p
    out = jnp.concatenate([x_proj, y], axis=-1)
    return jnp.transpose(out, (0, 3, 1, 2))


# ----------------------------- main -----------------------------

if __name__ == "__main__":
    key = jax.random.PRNGKey(0)
    kx1, kp1, kx2, kp2, kx3, kp3 = jax.random.split(key, 6)

    B, H, W = 2, 16, 16

    # Config 1: stride=1, iteration=1  (channel_shuffle + pass-through concat path)
    inp, oup, mid = 4, 8, 8
    x1 = jax.random.normal(kx1, (B, 2 * inp, H, W), jnp.float32)
    p1 = make_params(kp1, inp, oup, mid, stride=1)
    blob1, lay1, m1 = prepare_weights(p1, H=H, W=W, stride=1, iteration=1)   # hoisted
    o1 = jax.block_until_ready(shuffle_xception_forward(x1, blob1, lay1, m1))
    r1 = reference_forward(x1, p1, stride=1, iteration=1)
    assert o1.shape == (B, oup, H, W), o1.shape
    np.testing.assert_allclose(np.asarray(o1), np.asarray(r1), rtol=2e-3, atol=2e-3)

    # Config 2: stride=2, iteration=1  (proj conv branch + spatial downsample)
    inp2, oup2, mid2 = 4, 12, 8
    x2 = jax.random.normal(kx2, (B, inp2, H, W), jnp.float32)
    p2 = make_params(kp2, inp2, oup2, mid2, stride=2)
    blob2, lay2, m2 = prepare_weights(p2, H=H, W=W, stride=2, iteration=1)   # hoisted
    o2 = jax.block_until_ready(shuffle_xception_forward(x2, blob2, lay2, m2))
    r2 = reference_forward(x2, p2, stride=2, iteration=1)
    assert o2.shape == (B, oup2, H // 2, W // 2), o2.shape
    np.testing.assert_allclose(np.asarray(o2), np.asarray(r2), rtol=2e-3, atol=2e-3)

    # Config 3: stride=2, iteration=0  (proj conv branch, all convs stride 1)
    x3 = jax.random.normal(kx3, (B, inp2, H, W), jnp.float32)
    p3 = make_params(kp3, inp2, oup2, mid2, stride=2)
    blob3, lay3, m3 = prepare_weights(p3, H=H, W=W, stride=2, iteration=0)   # hoisted
    o3 = jax.block_until_ready(shuffle_xception_forward(x3, blob3, lay3, m3))
    r3 = reference_forward(x3, p3, stride=2, iteration=0)
    assert o3.shape == (B, oup2, H, W), o3.shape
    np.testing.assert_allclose(np.asarray(o3), np.asarray(r3), rtol=2e-3, atol=2e-3)

    print("KERNEL_OK")
</pallas_src>

<mosaic_0001>
module attributes {stable_mosaic.version = 11 : i64} {
  func.func @_fused_kernel(%arg0: i32, %arg1: memref<1x16x128xf32, #tpu.memory_space<vmem>>, %arg2: memref<672x128xf32, #tpu.memory_space<vmem>>, %arg3: memref<1x16x128xf32, #tpu.memory_space<vmem>>) attributes {dimension_semantics = [#tpu.dimension_semantics<parallel>], iteration_bounds = array<i64: 2>, scalar_prefetch = 0 : i64, scratch_operands = 0 : i64, tpu.core_type = #tpu.core_type<tc>, window_params = [{transform_indices = @transform_0, window_bounds = array<i64: 1, 16, 128>}, {pipeline_mode = #tpu.pipeline_mode<synchronous>, transform_indices = @transform_1, window_bounds = array<i64: 672, 128>}, {transform_indices = @transform_2, window_bounds = array<i64: 1, 16, 128>}]} {
    %c0 = arith.constant 0 : index
    %c0_0 = arith.constant 0 : index
    %c0_1 = arith.constant 0 : index
    %0 = vector.load %arg1[%c0, %c0_0, %c0_1] : memref<1x16x128xf32, #tpu.memory_space<vmem>>, vector<1x16x128xf32>
    %1 = vector.shape_cast %0 : vector<1x16x128xf32> to vector<16x128xf32>
    %c416 = arith.constant 416 : index
    %c0_2 = arith.constant 0 : index
    %2 = vector.load %arg2[%c416, %c0_2] : memref<672x128xf32, #tpu.memory_space<vmem>>, vector<128x64xf32>
    %cst = arith.constant dense<0.000000e+00> : vector<16x64xf32>
    %3 = tpu.matmul %1, %2, %cst {dimension_numbers = #tpu.dot_dimension_numbers<[1], [0], [0], [1], [0, 0, 1, 1], [], []>} : vector<16x128xf32>, vector<128x64xf32>, vector<16x64xf32> -> vector<16x64xf32>
    %c0_3 = arith.constant 0 : index
    %c0_4 = arith.constant 0 : index
    %4 = vector.load %arg2[%c0_3, %c0_4] : memref<672x128xf32, #tpu.memory_space<vmem>>, vector<9x64xf32>
    %c16 = arith.constant 16 : index
    %c0_5 = arith.constant 0 : index
    %5 = vector.load %arg2[%c16, %c0_5] : memref<672x128xf32, #tpu.memory_space<vmem>>, vector<1x64xf32>
    %6 = vector.extract_strided_slice %3 {offsets = [0, 60], sizes = [16, 4], strides = [1, 1]} : vector<16x64xf32> to vector<16x4xf32>
    %7 = vector.extract_strided_slice %3 {offsets = [0, 0], sizes = [16, 60], strides = [1, 1]} : vector<16x64xf32> to vector<16x60xf32>
    %8 = tpu.concatenate %6, %7 in 1 : vector<16x4xf32>, vector<16x60xf32> -> vector<16x64xf32>
    %9 = vector.extract_strided_slice %3 {offsets = [0, 4], sizes = [16, 60], strides = [1, 1]} : vector<16x64xf32> to vector<16x60xf32>
    %10 = vector.extract_strided_slice %3 {offsets = [0, 0], sizes = [16, 4], strides = [1, 1]} : vector<16x64xf32> to vector<16x4xf32>
    %11 = tpu.concatenate %9, %10 in 1 : vector<16x60xf32>, vector<16x4xf32> -> vector<16x64xf32>
    %cst_6 = arith.constant 0.000000e+00 : f32
    %12 = vector.broadcast %cst_6 : f32 to vector<1x64xf32>
    %cst_7 = arith.constant 0.000000e+00 : f32
    %13 = vector.broadcast %cst_7 : f32 to vector<16x64xf32>
    %14 = tpu.concatenate %12, %8, %12 in 0 : vector<1x64xf32>, vector<16x64xf32>, vector<1x64xf32> -> vector<18x64xf32>
    %15 = vector.extract_strided_slice %14 {offsets = [0, 0], sizes = [16, 64], strides = [1, 1]} : vector<18x64xf32> to vector<16x64xf32>
    %16 = vector.extract_strided_slice %4 {offsets = [0, 0], sizes = [1, 64], strides = [1, 1]} : vector<9x64xf32> to vector<1x64xf32>
    %17 = vector.broadcast %16 : vector<1x64xf32> to vector<16x64xf32>
    %18 = arith.mulf %15, %17 : vector<16x64xf32>
    %19 = arith.addf %13, %18 : vector<16x64xf32>
    %20 = vector.extract_strided_slice %14 {offsets = [1, 0], sizes = [16, 64], strides = [1, 1]} : vector<18x64xf32> to vector<16x64xf32>
    %21 = vector.extract_strided_slice %4 {offsets = [3, 0], sizes = [1, 64], strides = [1, 1]} : vector<9x64xf32> to vector<1x64xf32>
    %22 = vector.broadcast %21 : vector<1x64xf32> to vector<16x64xf32>
    %23 = arith.mulf %20, %22 : vector<16x64xf32>
    %24 = arith.addf %19, %23 : vector<16x64xf32>
    %25 = vector.extract_strided_slice %14 {offsets = [2, 0], sizes = [16, 64], strides = [1, 1]} : vector<18x64xf32> to vector<16x64xf32>
    %26 = vector.extract_strided_slice %4 {offsets = [6, 0], sizes = [1, 64], strides = [1, 1]} : vector<9x64xf32> to vector<1x64xf32>
    %27 = vector.broadcast %26 : vector<1x64xf32> to vector<16x64xf32>
    %28 = arith.mulf %25, %27 : vector<16x64xf32>
    %29 = arith.addf %24, %28 : vector<16x64xf32>
    %30 = tpu.concatenate %12, %3, %12 in 0 : vector<1x64xf32>, vector<16x64xf32>, vector<1x64xf32> -> vector<18x64xf32>
    %31 = vector.extract_strided_slice %30 {offsets = [0, 0], sizes = [16, 64], strides = [1, 1]} : vector<18x64xf32> to vector<16x64xf32>
    %32 = vector.extract_strided_slice %4 {offsets = [1, 0], sizes = [1, 64], strides = [1, 1]} : vector<9x64xf32> to vector<1x64xf32>
    %33 = vector.broadcast %32 : vector<1x64xf32> to vector<16x64xf32>
    %34 = arith.mulf %31, %33 : vector<16x64xf32>
    %35 = arith.addf %29, %34 : vector<16x64xf32>
    %36 = vector.extract_strided_slice %30 {offsets = [1, 0], sizes = [16, 64], strides = [1, 1]} : vector<18x64xf32> to vector<16x64xf32>
    %37 = vector.extract_strided_slice %4 {offsets = [4, 0], sizes = [1, 64], strides = [1, 1]} : vector<9x64xf32> to vector<1x64xf32>
    %38 = vector.broadcast %37 : vector<1x64xf32> to vector<16x64xf32>
    %39 = arith.mulf %36, %38 : vector<16x64xf32>
    %40 = arith.addf %35, %39 : vector<16x64xf32>
    %41 = vector.extract_strided_slice %30 {offsets = [2, 0], sizes = [16, 64], strides = [1, 1]} : vector<18x64xf32> to vector<16x64xf32>
    %42 = vector.extract_strided_slice %4 {offsets = [7, 0], sizes = [1, 64], strides = [1, 1]} : vector<9x64xf32> to vector<1x64xf32>
    %43 = vector.broadcast %42 : vector<1x64xf32> to vector<16x64xf32>
    %44 = arith.mulf %41, %43 : vector<16x64xf32>
    %45 = arith.addf %40, %44 : vector<16x64xf32>
    %46 = tpu.concatenate %12, %11, %12 in 0 : vector<1x64xf32>, vector<16x64xf32>, vector<1x64xf32> -> vector<18x64xf32>
    %47 = vector.extract_strided_slice %46 {offsets = [0, 0], sizes = [16, 64], strides = [1, 1]} : vector<18x64xf32> to vector<16x64xf32>
    %48 = vector.extract_strided_slice %4 {offsets = [2, 0], sizes = [1, 64], strides = [1, 1]} : vector<9x64xf32> to vector<1x64xf32>
    %49 = vector.broadcast %48 : vector<1x64xf32> to vector<16x64xf32>
    %50 = arith.mulf %47, %49 : vector<16x64xf32>
    %51 = arith.addf %45, %50 : vector<16x64xf32>
    %52 = vector.extract_strided_slice %46 {offsets = [1, 0], sizes = [16, 64], strides = [1, 1]} : vector<18x64xf32> to vector<16x64xf32>
    %53 = vector.extract_strided_slice %4 {offsets = [5, 0], sizes = [1, 64], strides = [1, 1]} : vector<9x64xf32> to vector<1x64xf32>
    %54 = vector.broadcast %53 : vector<1x64xf32> to vector<16x64xf32>
    %55 = arith.mulf %52, %54 : vector<16x64xf32>
    %56 = arith.addf %51, %55 : vector<16x64xf32>
    %57 = vector.extract_strided_slice %46 {offsets = [2, 0], sizes = [16, 64], strides = [1, 1]} : vector<18x64xf32> to vector<16x64xf32>
    %58 = vector.extract_strided_slice %4 {offsets = [8, 0], sizes = [1, 64], strides = [1, 1]} : vector<9x64xf32> to vector<1x64xf32>
    %59 = vector.broadcast %58 : vector<1x64xf32> to vector<16x64xf32>
    %60 = arith.mulf %57, %59 : vector<16x64xf32>
    %61 = arith.addf %56, %60 : vector<16x64xf32>
    %62 = vector.broadcast %5 : vector<1x64xf32> to vector<16x64xf32>
    %63 = arith.addf %61, %62 : vector<16x64xf32>
    %c72 = arith.constant 72 : index
    %c0_8 = arith.constant 0 : index
    %64 = vector.load %arg2[%c72, %c0_8] : memref<672x128xf32, #tpu.memory_space<vmem>>, vector<64x128xf32>
    %cst_9 = arith.constant dense<0.000000e+00> : vector<16x128xf32>
    %65 = tpu.matmul %63, %64, %cst_9 {dimension_numbers = #tpu.dot_dimension_numbers<[1], [0], [0], [1], [0, 0, 1, 1], [], []>} : vector<16x64xf32>, vector<64x128xf32>, vector<16x128xf32> -> vector<16x128xf32>
    %c136 = arith.constant 136 : index
    %c0_10 = arith.constant 0 : index
    %66 = vector.load %arg2[%c136, %c0_10] : memref<672x128xf32, #tpu.memory_space<vmem>>, vector<1x128xf32>
    %67 = vector.broadcast %66 : vector<1x128xf32> to vector<16x128xf32>
    %68 = arith.addf %65, %67 : vector<16x128xf32>
    %cst_11 = arith.constant 0.000000e+00 : f32
    %69 = vector.broadcast %cst_11 : f32 to vector<16x128xf32>
    %70 = arith.maximumf %68, %69 : vector<16x128xf32>
    %c24 = arith.constant 24 : index
    %c0_12 = arith.constant 0 : index
    %71 = vector.load %arg2[%c24, %c0_12] : memref<672x128xf32, #tpu.memory_space<vmem>>, vector<9x128xf32>
    %c40 = arith.constant 40 : index
    %c0_13 = arith.constant 0 : index
    %72 = vector.load %arg2[%c40, %c0_13] : memref<672x128xf32, #tpu.memory_space<vmem>>, vector<1x128xf32>
    %73 = vector.extract_strided_slice %70 {offsets = [0, 120], sizes = [16, 8], strides = [1, 1]} : vector<16x128xf32> to vector<16x8xf32>
    %74 = vector.extract_strided_slice %70 {offsets = [0, 0], sizes = [16, 120], strides = [1, 1]} : vector<16x128xf32> to vector<16x120xf32>
    %75 = tpu.concatenate %73, %74 in 1 : vector<16x8xf32>, vector<16x120xf32> -> vector<16x128xf32>
    %76 = vector.extract_strided_slice %70 {offsets = [0, 8], sizes = [16, 120], strides = [1, 1]} : vector<16x128xf32> to vector<16x120xf32>
    %77 = vector.extract_strided_slice %70 {offsets = [0, 0], sizes = [16, 8], strides = [1, 1]} : vector<16x128xf32> to vector<16x8xf32>
    %78 = tpu.concatenate %76, %77 in 1 : vector<16x120xf32>, vector<16x8xf32> -> vector<16x128xf32>
    %cst_14 = arith.constant 0.000000e+00 : f32
    %79 = vector.broadcast %cst_14 : f32 to vector<1x128xf32>
    %cst_15 = arith.constant 0.000000e+00 : f32
    %80 = vector.broadcast %cst_15 : f32 to vector<16x128xf32>
    %81 = tpu.concatenate %79, %75, %79 in 0 : vector<1x128xf32>, vector<16x128xf32>, vector<1x128xf32> -> vector<18x128xf32>
    %82 = vector.extract_strided_slice %81 {offsets = [0, 0], sizes = [16, 128], strides = [1, 1]} : vector<18x128xf32> to vector<16x128xf32>
    %83 = vector.extract_strided_slice %71 {offsets = [0, 0], sizes = [1, 128], strides = [1, 1]} : vector<9x128xf32> to vector<1x128xf32>
    %84 = vector.broadcast %83 : vector<1x128xf32> to vector<16x128xf32>
    %85 = arith.mulf %82, %84 : vector<16x128xf32>
    %86 = arith.addf %80, %85 : vector<16x128xf32>
    %87 = vector.extract_strided_slice %81 {offsets = [1, 0], sizes = [16, 128], strides = [1, 1]} : vector<18x128xf32> to vector<16x128xf32>
    %88 = vector.extract_strided_slice %71 {offsets = [3, 0], sizes = [1, 128], strides = [1, 1]} : vector<9x128xf32> to vector<1x128xf32>
    %89 = vector.broadcast %88 : vector<1x128xf32> to vector<16x128xf32>
    %90 = arith.mulf %87, %89 : vector<16x128xf32>
    %91 = arith.addf %86, %90 : vector<16x128xf32>
    %92 = vector.extract_strided_slice %81 {offsets = [2, 0], sizes = [16, 128], strides = [1, 1]} : vector<18x128xf32> to vector<16x128xf32>
    %93 = vector.extract_strided_slice %71 {offsets = [6, 0], sizes = [1, 128], strides = [1, 1]} : vector<9x128xf32> to vector<1x128xf32>
    %94 = vector.broadcast %93 : vector<1x128xf32> to vector<16x128xf32>
    %95 = arith.mulf %92, %94 : vector<16x128xf32>
    %96 = arith.addf %91, %95 : vector<16x128xf32>
    %97 = tpu.concatenate %79, %70, %79 in 0 : vector<1x128xf32>, vector<16x128xf32>, vector<1x128xf32> -> vector<18x128xf32>
    %98 = vector.extract_strided_slice %97 {offsets = [0, 0], sizes = [16, 128], strides = [1, 1]} : vector<18x128xf32> to vector<16x128xf32>
    %99 = vector.extract_strided_slice %71 {offsets = [1, 0], sizes = [1, 128], strides = [1, 1]} : vector<9x128xf32> to vector<1x128xf32>
    %100 = vector.broadcast %99 : vector<1x128xf32> to vector<16x128xf32>
    %101 = arith.mulf %98, %100 : vector<16x128xf32>
    %102 = arith.addf %96, %101 : vector<16x128xf32>
    %103 = vector.extract_strided_slice %97 {offsets = [1, 0], sizes = [16, 128], strides = [1, 1]} : vector<18x128xf32> to vector<16x128xf32>
    %104 = vector.extract_strided_slice %71 {offsets = [4, 0], sizes = [1, 128], strides = [1, 1]} : vector<9x128xf32> to vector<1x128xf32>
    %105 = vector.broadcast %104 : vector<1x128xf32> to vector<16x128xf32>
    %106 = arith.mulf %103, %105 : vector<16x128xf32>
    %107 = arith.addf %102, %106 : vector<16x128xf32>
    %108 = vector.extract_strided_slice %97 {offsets = [2, 0], sizes = [16, 128], strides = [1, 1]} : vector<18x128xf32> to vector<16x128xf32>
    %109 = vector.extract_strided_slice %71 {offsets = [7, 0], sizes = [1, 128], strides = [1, 1]} : vector<9x128xf32> to vector<1x128xf32>
    %110 = vector.broadcast %109 : vector<1x128xf32> to vector<16x128xf32>
    %111 = arith.mulf %108, %110 : vector<16x128xf32>
    %112 = arith.addf %107, %111 : vector<16x128xf32>
    %113 = tpu.concatenate %79, %78, %79 in 0 : vector<1x128xf32>, vector<16x128xf32>, vector<1x128xf32> -> vector<18x128xf32>
    %114 = vector.extract_strided_slice %113 {offsets = [0, 0], sizes = [16, 128], strides = [1, 1]} : vector<18x128xf32> to vector<16x128xf32>
    %115 = vector.extract_strided_slice %71 {offsets = [2, 0], sizes = [1, 128], strides = [1, 1]} : vector<9x128xf32> to vector<1x128xf32>
    %116 = vector.broadcast %115 : vector<1x128xf32> to vector<16x128xf32>
    %117 = arith.mulf %114, %116 : vector<16x128xf32>
    %118 = arith.addf %112, %117 : vector<16x128xf32>
    %119 = vector.extract_strided_slice %113 {offsets = [1, 0], sizes = [16, 128], strides = [1, 1]} : vector<18x128xf32> to vector<16x128xf32>
    %120 = vector.extract_strided_slice %71 {offsets = [5, 0], sizes = [1, 128], strides = [1, 1]} : vector<9x128xf32> to vector<1x128xf32>
    %121 = vector.broadcast %120 : vector<1x128xf32> to vector<16x128xf32>
    %122 = arith.mulf %119, %121 : vector<16x128xf32>
    %123 = arith.addf %118, %122 : vector<16x128xf32>
    %124 = vector.extract_strided_slice %113 {offsets = [2, 0], sizes = [16, 128], strides = [1, 1]} : vector<18x128xf32> to vector<16x128xf32>
    %125 = vector.extract_strided_slice %71 {offsets = [8, 0], sizes = [1, 128], strides = [1, 1]} : vector<9x128xf32> to vector<1x128xf32>
    %126 = vector.broadcast %125 : vector<1x128xf32> to vector<16x128xf32>
    %127 = arith.mulf %124, %126 : vector<16x128xf32>
    %128 = arith.addf %123, %127 : vector<16x128xf32>
    %129 = vector.broadcast %72 : vector<1x128xf32> to vector<16x128xf32>
    %130 = arith.addf %128, %129 : vector<16x128xf32>
    %c144 = arith.constant 144 : index
    %c0_16 = arith.constant 0 : index
    %131 = vector.load %arg2[%c144, %c0_16] : memref<672x128xf32, #tpu.memory_space<vmem>>, vector<128x128xf32>
    %cst_17 = arith.constant dense<0.000000e+00> : vector<16x128xf32>
    %132 = tpu.matmul %130, %131, %cst_17 {dimension_numbers = #tpu.dot_dimension_numbers<[1], [0], [0], [1], [0, 0, 1, 1], [], []>} : vector<16x128xf32>, vector<128x128xf32>, vector<16x128xf32> -> vector<16x128xf32>
    %c272 = arith.constant 272 : index
    %c0_18 = arith.constant 0 : index
    %133 = vector.load %arg2[%c272, %c0_18] : memref<672x128xf32, #tpu.memory_space<vmem>>, vector<1x128xf32>
    %134 = vector.broadcast %133 : vector<1x128xf32> to vector<16x128xf32>
    %135 = arith.addf %132, %134 : vector<16x128xf32>
    %cst_19 = arith.constant 0.000000e+00 : f32
    %136 = vector.broadcast %cst_19 : f32 to vector<16x128xf32>
    %137 = arith.maximumf %135, %136 : vector<16x128xf32>
    %c48 = arith.constant 48 : index
    %c0_20 = arith.constant 0 : index
    %138 = vector.load %arg2[%c48, %c0_20] : memref<672x128xf32, #tpu.memory_space<vmem>>, vector<9x128xf32>
    %c64 = arith.constant 64 : index
    %c0_21 = arith.constant 0 : index
    %139 = vector.load %arg2[%c64, %c0_21] : memref<672x128xf32, #tpu.memory_space<vmem>>, vector<1x128xf32>
    %140 = vector.extract_strided_slice %137 {offsets = [0, 120], sizes = [16, 8], strides = [1, 1]} : vector<16x128xf32> to vector<16x8xf32>
    %141 = vector.extract_strided_slice %137 {offsets = [0, 0], sizes = [16, 120], strides = [1, 1]} : vector<16x128xf32> to vector<16x120xf32>
    %142 = tpu.concatenate %140, %141 in 1 : vector<16x8xf32>, vector<16x120xf32> -> vector<16x128xf32>
    %143 = vector.extract_strided_slice %137 {offsets = [0, 8], sizes = [16, 120], strides = [1, 1]} : vector<16x128xf32> to vector<16x120xf32>
    %144 = vector.extract_strided_slice %137 {offsets = [0, 0], sizes = [16, 8], strides = [1, 1]} : vector<16x128xf32> to vector<16x8xf32>
    %145 = tpu.concatenate %143, %144 in 1 : vector<16x120xf32>, vector<16x8xf32> -> vector<16x128xf32>
    %cst_22 = arith.constant 0.000000e+00 : f32
    %146 = vector.broadcast %cst_22 : f32 to vector<1x128xf32>
    %cst_23 = arith.constant 0.000000e+00 : f32
    %147 = vector.broadcast %cst_23 : f32 to vector<16x128xf32>
    %148 = tpu.concatenate %146, %142, %146 in 0 : vector<1x128xf32>, vector<16x128xf32>, vector<1x128xf32> -> vector<18x128xf32>
    %149 = vector.extract_strided_slice %148 {offsets = [0, 0], sizes = [16, 128], strides = [1, 1]} : vector<18x128xf32> to vector<16x128xf32>
    %150 = vector.extract_strided_slice %138 {offsets = [0, 0], sizes = [1, 128], strides = [1, 1]} : vector<9x128xf32> to vector<1x128xf32>
    %151 = vector.broadcast %150 : vector<1x128xf32> to vector<16x128xf32>
    %152 = arith.mulf %149, %151 : vector<16x128xf32>
    %153 = arith.addf %147, %152 : vector<16x128xf32>
    %154 = vector.extract_strided_slice %148 {offsets = [1, 0], sizes = [16, 128], strides = [1, 1]} : vector<18x128xf32> to vector<16x128xf32>
    %155 = vector.extract_strided_slice %138 {offsets = [3, 0], sizes = [1, 128], strides = [1, 1]} : vector<9x128xf32> to vector<1x128xf32>
    %156 = vector.broadcast %155 : vector<1x128xf32> to vector<16x128xf32>
    %157 = arith.mulf %154, %156 : vector<16x128xf32>
    %158 = arith.addf %153, %157 : vector<16x128xf32>
    %159 = vector.extract_strided_slice %148 {offsets = [2, 0], sizes = [16, 128], strides = [1, 1]} : vector<18x128xf32> to vector<16x128xf32>
    %160 = vector.extract_strided_slice %138 {offsets = [6, 0], sizes = [1, 128], strides = [1, 1]} : vector<9x128xf32> to vector<1x128xf32>
    %161 = vector.broadcast %160 : vector<1x128xf32> to vector<16x128xf32>
    %162 = arith.mulf %159, %161 : vector<16x128xf32>
    %163 = arith.addf %158, %162 : vector<16x128xf32>
    %164 = tpu.concatenate %146, %137, %146 in 0 : vector<1x128xf32>, vector<16x128xf32>, vector<1x128xf32> -> vector<18x128xf32>
    %165 = vector.extract_strided_slice %164 {offsets = [0, 0], sizes = [16, 128], strides = [1, 1]} : vector<18x128xf32> to vector<16x128xf32>
    %166 = vector.extract_strided_slice %138 {offsets = [1, 0], sizes = [1, 128], strides = [1, 1]} : vector<9x128xf32> to vector<1x128xf32>
    %167 = vector.broadcast %166 : vector<1x128xf32> to vector<16x128xf32>
    %168 = arith.mulf %165, %167 : vector<16x128xf32>
    %169 = arith.addf %163, %168 : vector<16x128xf32>
    %170 = vector.extract_strided_slice %164 {offsets = [1, 0], sizes = [16, 128], strides = [1, 1]} : vector<18x128xf32> to vector<16x128xf32>
    %171 = vector.extract_strided_slice %138 {offsets = [4, 0], sizes = [1, 128], strides = [1, 1]} : vector<9x128xf32> to vector<1x128xf32>
    %172 = vector.broadcast %171 : vector<1x128xf32> to vector<16x128xf32>
    %173 = arith.mulf %170, %172 : vector<16x128xf32>
    %174 = arith.addf %169, %173 : vector<16x128xf32>
    %175 = vector.extract_strided_slice %164 {offsets = [2, 0], sizes = [16, 128], strides = [1, 1]} : vector<18x128xf32> to vector<16x128xf32>
    %176 = vector.extract_strided_slice %138 {offsets = [7, 0], sizes = [1, 128], strides = [1, 1]} : vector<9x128xf32> to vector<1x128xf32>
    %177 = vector.broadcast %176 : vector<1x128xf32> to vector<16x128xf32>
    %178 = arith.mulf %175, %177 : vector<16x128xf32>
    %179 = arith.addf %174, %178 : vector<16x128xf32>
    %180 = tpu.concatenate %146, %145, %146 in 0 : vector<1x128xf32>, vector<16x128xf32>, vector<1x128xf32> -> vector<18x128xf32>
    %181 = vector.extract_strided_slice %180 {offsets = [0, 0], sizes = [16, 128], strides = [1, 1]} : vector<18x128xf32> to vector<16x128xf32>
    %182 = vector.extract_strided_slice %138 {offsets = [2, 0], sizes = [1, 128], strides = [1, 1]} : vector<9x128xf32> to vector<1x128xf32>
    %183 = vector.broadcast %182 : vector<1x128xf32> to vector<16x128xf32>
    %184 = arith.mulf %181, %183 : vector<16x128xf32>
    %185 = arith.addf %179, %184 : vector<16x128xf32>
    %186 = vector.extract_strided_slice %180 {offsets = [1, 0], sizes = [16, 128], strides = [1, 1]} : vector<18x128xf32> to vector<16x128xf32>
    %187 = vector.extract_strided_slice %138 {offsets = [5, 0], sizes = [1, 128], strides = [1, 1]} : vector<9x128xf32> to vector<1x128xf32>
    %188 = vector.broadcast %187 : vector<1x128xf32> to vector<16x128xf32>
    %189 = arith.mulf %186, %188 : vector<16x128xf32>
    %190 = arith.addf %185, %189 : vector<16x128xf32>
    %191 = vector.extract_strided_slice %180 {offsets = [2, 0], sizes = [16, 128], strides = [1, 1]} : vector<18x128xf32> to vector<16x128xf32>
    %192 = vector.extract_strided_slice %138 {offsets = [8, 0], sizes = [1, 128], strides = [1, 1]} : vector<9x128xf32> to vector<1x128xf32>
    %193 = vector.broadcast %192 : vector<1x128xf32> to vector<16x128xf32>
    %194 = arith.mulf %191, %193 : vector<16x128xf32>
    %195 = arith.addf %190, %194 : vector<16x128xf32>
    %196 = vector.broadcast %139 : vector<1x128xf32> to vector<16x128xf32>
    %197 = arith.addf %195, %196 : vector<16x128xf32>
    %c280 = arith.constant 280 : index
    %c0_24 = arith.constant 0 : index
    %198 = vector.load %arg2[%c280, %c0_24] : memref<672x128xf32, #tpu.memory_space<vmem>>, vector<128x128xf32>
    %cst_25 = arith.constant dense<0.000000e+00> : vector<16x128xf32>
    %199 = tpu.matmul %197, %198, %cst_25 {dimension_numbers = #tpu.dot_dimension_numbers<[1], [0], [0], [1], [0, 0, 1, 1], [], []>} : vector<16x128xf32>, vector<128x128xf32>, vector<16x128xf32> -> vector<16x128xf32>
    %c408 = arith.constant 408 : index
    %c0_26 = arith.constant 0 : index
    %200 = vector.load %arg2[%c408, %c0_26] : memref<672x128xf32, #tpu.memory_space<vmem>>, vector<1x128xf32>
    %201 = vector.broadcast %200 : vector<1x128xf32> to vector<16x128xf32>
    %202 = arith.addf %199, %201 : vector<16x128xf32>
    %cst_27 = arith.constant 0.000000e+00 : f32
    %203 = vector.broadcast %cst_27 : f32 to vector<16x128xf32>
    %204 = arith.maximumf %202, %203 : vector<16x128xf32>
    %c544 = arith.constant 544 : index
    %c0_28 = arith.constant 0 : index
    %205 = vector.load %arg2[%c544, %c0_28] : memref<672x128xf32, #tpu.memory_space<vmem>>, vector<128x128xf32>
    %cst_29 = arith.constant dense<0.000000e+00> : vector<16x128xf32>
    %206 = tpu.matmul %1, %205, %cst_29 {dimension_numbers = #tpu.dot_dimension_numbers<[1], [0], [0], [1], [0, 0, 1, 1], [], []>} : vector<16x128xf32>, vector<128x128xf32>, vector<16x128xf32> -> vector<16x128xf32>
    %207 = arith.addf %206, %204 : vector<16x128xf32>
    %c0_30 = arith.constant 0 : index
    %c0_31 = arith.constant 0 : index
    %c0_32 = arith.constant 0 : index
    %208 = vector.load %arg3[%c0_30, %c0_31, %c0_32] : memref<1x16x128xf32, #tpu.memory_space<vmem>>, vector<1x16x128xf32>
    %209 = vector.shape_cast %208 : vector<1x16x128xf32> to vector<16x128xf32>
    %210 = vector.shape_cast %207 : vector<16x128xf32> to vector<1x16x128xf32>
    tpu.vector_store %arg3[%c0_30, %c0_31, %c0_32], %210 {strides = array<i32>} : memref<1x16x128xf32, #tpu.memory_space<vmem>>, vector<1x16x128xf32>,
    return
  }
  func.func @transform_0(%arg0: i32) -> (i32, i32, i32) {
    %c0_i32 = arith.constant 0 : i32
    %c0_i32_0 = arith.constant 0 : i32
    %c0_i32_1 = arith.constant 0 : i32
    return %arg0, %c0_i32, %c0_i32_0 : i32, i32, i32
  }
  func.func @transform_1(%arg0: i32) -> (i32, i32) {
    %c0_i32 = arith.constant 0 : i32
    %c0_i32_0 = arith.constant 0 : i32
    %c0_i32_1 = arith.constant 0 : i32
    return %c0_i32, %c0_i32_0 : i32, i32
  }
  func.func @transform_2(%arg0: i32) -> (i32, i32, i32) {
    %c0_i32 = arith.constant 0 : i32
    %c0_i32_0 = arith.constant 0 : i32
    %c0_i32_1 = arith.constant 0 : i32
    return %arg0, %c0_i32, %c0_i32_0 : i32, i32, i32
  }
}

</mosaic_0001>

<bundles_post_ra>
// kernel: tpu_custom_call.1
= control target key start
LH: loop header
LB: loop body
LE: loop exit
PB: predicated region body
PF: predicated region fallthrough
CT: control target
= control target key end

     0   :  { %7 = vsyncpa [#allocation3], 0  ;;  %s1572_s0 = inlined_call_operand.hbm [shape: f32[2,16,128], index: 0, kind: input, shape index: {}]   ;;  %s1573_s1 = inlined_call_operand.hbm [shape: f32[672,128], index: 1, kind: input, shape index: {}]   ;;  %s1574_s2 = inlined_call_operand.hbm [shape: f32[2,16,128], index: 2, kind: output, shape index: {}]  }
   0x1   :  { %9 = vsyncpa [#allocation3 + $0x1], 0 }
   0x2   :  { %10 = vsyncpa [#allocation6], 0 }
   0x3   :  { %11 = vsyncpa [#allocation4], 0 }
   0x4   :  { %13 = vsyncpa [#allocation4 + $0x1], 0  ;;  %s1240_s9 = smov 0   ;;  %s1242_s10 = smov 0  }
   0x5   :  { %s1244_s11 = smov 0   ;;  %s1246_s12 = smov 0  }
   0x6 LB: > { %s1261_s13 = sadd.s32 4294967295, %s1213_s12   ;;  %s988_s14 = sadd.s32 4294967294, %s1213_s12   ;;  %s1213_s12 = sphi %s1246_s12, %s1584_s12   ;;  %s1209_s11 = sphi %s1244_s11, %s1583_s11   ;;  %s1205_s10 = sphi %s1242_s10, %s1582_s10   ;;  %s1201_s9 = sphi %s1240_s9, %s1581_s9  }
   0x7   : > { %p39_p0 = scmp.ne.s32.totalorder %s1205_s10, %s1201_s9  ;;  %p40_p1 = scmp.eq.s32.totalorder %s1261_s13, 0 }
   0x8   : > { %p84_p2 = scmp.eq.s32.totalorder %s1261_s13, 1  ;;  %p90_p3 = scmp.eq.s32.totalorder %s988_s14, 1 }
   0x9   : > { %p1270_p4 = por %p40_p1, %p39_p0  ;;  %p989_p5 = scmp.ge.s32.totalorder %s1213_s12, 1 }
   0xa   : > { %p1275_p6 = por %p90_p3, %p39_p0  ;;  %p97_p7 = scmp.lt.s32.totalorder %s1213_s12, 3 }
   0xb   : > { %s108_s19 = sshll.u32 %s1573_s1, 4  ;;  %s1215_s21 = smov [#allocation5]   ;;  %s109_s19 = int_to_ptr.hbm [resolvable:$true] %s108_s19 }
   0xc   : > { %p1283_p8 = pnand %p989_p5, %p97_p7  ;;  %s110_s22 = sshll.u32 %s1215_s21, 4  ;;  %s111_s22 = int_to_ptr.vmem [resolvable:$true] %s110_s22 }
   0xd   : > { %s1293_s23 = sadd.s32 1, %s1213_s12   ;;  %s1216_s24 = smov 128  }
   0xe   : > { %p1016_p9 = pneg %p1283_p8  ;;  %s1217_s25 = smov 8  }
   0xf   : > { %s23_s26 = ssub.s32 %s1213_s12, %s1293_s23  ;;  %s26_s27 = sadd.s32 1, %s1209_s11 }
  0x10   : > { %p1017_p10 = pnand %p1016_p9, %p40_p1  ;;  %p24_p12 = scmp.eq.s32.totalorder %s23_s26, 0 }
  0x11   : > { %p33_p13 = scmp.ne.s32.totalorder %s1209_s11, %s1205_s10  ;;  %p34_p0 = scmp.eq.s32.totalorder %s1213_s12, 0 }
  0x12   : > { %1019 = dma.hbm_to_vmem [thread:$0]  (!%p1017_p10), %s109_s19, 10752, %s111_s22, [#allocation6], %s1216_s24, %s1216_s24, %s1217_s25  }
  0x13   : > { %s1305_s28 = scalar_select %p24_p12, %s1209_s11, %s26_s27  }
  0x14   : > { %p1309_p3 = por %p84_p2, %p33_p13  ;;  %p1029_p5 = scmp.lt.s32.totalorder %s1213_s12, 2 }
  0x15   : > { %s124_s30 = sand.u32 1, %s1209_s11   ;;  %s1006_s3 = sshll.u32 %s1213_s12, 4 }
  0x16   : > { %p35_p7 = por %p34_p0, %p33_p13  ;;  %s992_s4 = sshll.u32 %s124_s30, 4 }
  0x17   : > { %s133_s7 = scalar_lea.hbm %s1572_s0, %s1006_s3  ;;  %s128_s14 = scalar_lea.vmem [#allocation2], %s992_s4 }
  0x18   : > { %s134_s8 = sshll.u32 %s133_s7, 4  ;;  %s136_s17 = sshll.u32 %s128_s14, 4  ;;  %s135_s8 = int_to_ptr.hbm [resolvable:$true] %s134_s8  ;;  %s137_s17 = int_to_ptr.vmem [resolvable:$true] %s136_s17 }
  0x19   : > { %p1319_p9 = pnand %p1029_p5, %p35_p7  ;;  %s125_s19 = scalar_lea.sflag [#allocation3], %s124_s30 }
  0x1a   : > { %s1113_s21 = sshra.s32 %s135_s8, 4  ;;  %s1120_s3 = scalar_lea.hbm %s1572_s0, 32  ;;  %s1114_s21 = int_to_ptr.hbm [resolvable:$true] %s1113_s21 }
  0x1b   : > { %s1115_s22 = scalar_lea.hbm %s1114_s21, 16  ;;  %p1117_p10 = pneg %p1319_p9 }
  0x1c   : > { %p1116_p2 = scmp.ne.s32.totalorder %s1114_s21, %s1115_s22  ;;  %p1121_p0 = scmp.lt.s32.totalorder %s1114_s21, %s1572_s0 }
  0x1d   : > { %p1122_p5 = scmp.lt.s32.totalorder %s1120_s3, %s1115_s22 }
  0x1e   : > { %p1118_p12 = pnand %p1117_p10, %p1116_p2 }
  0x1f   : > { %p1123_p7 = por %p1122_p5, %p1121_p0 }
  0x20   : > { %p1119_p13 = pneg %p1118_p12 }
  0x22   : > { %p1124_p11 = pnand %p1123_p7, %p1119_p13 }
  0x24   : > { %1127 = shalt.err (!%p1124_p11)
}
  0x25   : > { %1023 = dma.hbm_to_vmem [thread:$0]  (!%p1319_p9), %s135_s8, 256, %s137_s17, %s125_s19, %s1216_s24, %s1216_s24, %s1217_s25  }
  0x26   : > { %148 = sbr.rel (%p1283_p8) target bundleno = 1069 (0x42d), region = 28  ;;  %s1339_s30 = sand.u32 (!%p1283_p8), 1, %s1205_s10  }
  0x27   : > { %s996_s6 = sshll.u32 (!%p1283_p8), %s1339_s30, 4  ;;  %s151_s7 = scalar_lea.sflag (!%p1283_p8), [#allocation3], %s1339_s30 }
  0x28   : > { %s1345_s14 = scalar_lea.vmem (!%p1283_p8), [#allocation2], %s996_s6 }
  0x2b   : > { %1188 = dma.done.wait (%p1270_p4), %s151_s7, 256  }
  0x2c   : > { %1190 = vsyncadd (%p1270_p4), %s151_s7, 4294967040 }
  0x2d   : > { %1192 = dma.done.wait (%p40_p1), [#allocation6], 10752  }
  0x2e   : > { %1194 = vsyncadd (%p40_p1), [#allocation6], 4294956544  ;;  %v198_v0 = vld [vmem:[#allocation5 + $0x218] sm:$0xff]  ;;  %v197_v1 = vld [vmem:[#allocation5 + $0x210] sm:$0xff]  ;;  %s1218_s15 = smov 124   ;;  %s1219_s20 = smov 4  }
  0x2f   : > { %199 = vmatpush.msra.mxu0 %v198_v0  ;;  %v196_v2 = vld [vmem:[#allocation5 + $0x208] sm:$0xff]  ;;  %v195_v3 = vld [vmem:[#allocation5 + $0x200] sm:$0xff]  ;;  %v194_v4 = vld [vmem:[#allocation5 + $0x1f8] sm:$0xff]  ;;  %s1220_s24 = smov 68   ;;  %vm259_vm0 = vcmask 1040384   ;;  %vm280_vm1 = vcmask 1046528  }
  0x30   : > { %v193_v5 = vld [vmem:[#allocation5 + $0x1f0] sm:$0xff]  ;;  %v192_v6 = vld [vmem:[#allocation5 + $0x1e8] sm:$0xff]  ;;  %v191_v7 = vld [vmem:[#allocation5 + $0x1e0] sm:$0xff]  ;;  %vm297_vm2 = vcmask 1045504   ;;  %s1221_s25 = smov 60   ;;  %vm239_vm3 = vcmask 31744  }
  0x31   : > { %200 = vmatpush.msra.mxu0 %v197_v1  ;;  %v190_v8 = vld [vmem:[#allocation5 + $0x1d8] sm:$0xff]  ;;  %v189_v9 = vld [vmem:[#allocation5 + $0x1d0] sm:$0xff]  ;;  %v188_v10 = vld [vmem:[#allocation5 + $0x1c8] sm:$0xff]  ;;  %vm254_vm4 = vcmask 490496   ;;  %vm412_vm5 = vcmask 523264   ;;  %s1222_s8 = smov 120  }
  0x32   : > { %v187_v11 = vld [vmem:[#allocation5 + $0x1c0] sm:$0xff]  ;;  %v186_v12 = vld [vmem:[#allocation5 + $0x1b8] sm:$0xff]  ;;  %v185_v13 = vld [vmem:[#allocation5 + $0x1b0] sm:$0xff]  ;;  %s1223_s17 = smov 8   ;;  %s1007_s18 = sshll.u32 %s1261_s13, 4 }
  0x33   : > { %201 = vmatpush.msra.mxu0 %v196_v2  ;;  %v184_v14 = vld [vmem:[#allocation5 + $0x1a8] sm:$0xff]  ;;  %v183_v15 = vld [vmem:[#allocation5 + $0x1a0] sm:$0xff]  ;;  %v408_v45 = vld [vmem:[#allocation5 + $0x78] sm:$0xff]  ;;  %s180_s19 = scalar_lea.vmem [#allocation7], %s996_s6  ;;  %s901_s26 = scalar_lea.hbm %s1574_s2, %s1007_s18 }
  0x34   : > { %v1356_v16 = vld [vmem:[%s1345_s14] sm:$0xff]  ;;  %v1360_v17 = vld [vmem:[%s1345_s14 + $0x8] sm:$0xff]  ;;  %s902_s27 = sshll.u32 %s180_s19, 4  ;;  %s904_s3 = sshll.u32 %s901_s26, 4  ;;  %s903_s27 = int_to_ptr.vmem [resolvable:$true] %s902_s27  ;;  %s905_s3 = int_to_ptr.hbm [resolvable:$true] %s904_s3 }
  0x35   : > { %202 = vmatpush.msra.mxu0 %v195_v3  ;;  %v1363_v19 = vld [vmem:[#allocation5] sm:$0xff]  ;;  %v407_v46 = vld [vmem:[#allocation5 + $0x70] sm:$0xff]  ;;  %v406_v47 = vld [vmem:[#allocation5 + $0x68] sm:$0xff]  ;;  %s890_s13 = scalar_lea.sflag [#allocation4], %s1339_s30  ;;  %s1157_s4 = sshra.s32 %s905_s3, 4  ;;  %s1158_s4 = int_to_ptr.hbm [resolvable:$true] %s1157_s4 }
  0x36   : > { %v320_v21 = vperm.slane %v1363_v19, 4  ;;  %v336_v23 = vperm.slane %v1363_v19, 7  ;;  %v409_v44 = vld [vmem:[#allocation5 + $0x80] sm:$0xff]  ;;  %v404_v50 = vld [vmem:[#allocation5 + $0x58] sm:$0xff]  ;;  %v403_v53 = vld [vmem:[#allocation5 + $0x50] sm:$0xff]  ;;  %v273_v57 = vperm.slane %v1363_v19, 3  ;;  %p1164_p11 = scmp.lt.s32.totalorder %s1158_s4, %s1574_s2 }
  0x37   : > { %203 = vmatpush.msra.mxu0 %v194_v4  ;;  %427 = vmatpush.msra.mxu1 %v409_v44  ;;  %v405_v48 = vld [vmem:[#allocation5 + $0x60] sm:$0xff]  ;;  %v402_v54 = vld [vmem:[#allocation5 + $0x48] sm:$0xff]  ;;  %v290_v61 = vperm.slane %v1363_v19, 6  ;;  %v268_v1 = vperm.slane %v1363_v19, 0  ;;  %s1159_s5 = scalar_lea.hbm %s1158_s4, 16  ;;  %s1163_s14 = scalar_lea.hbm %s1574_s2, 32 }
  0x38   : > { %p1160_p1 = scmp.ne.s32.totalorder %s1158_s4, %s1159_s5  ;;  %p1165_p9 = scmp.lt.s32.totalorder %s1163_s14, %s1159_s5 }
  0x39   : > { %204 = vmatpush.msra.mxu0 %v193_v5  ;;  %428 = vmatpush.msra.mxu1 %v408_v45  ;;  %v1074_v45 = vld [vmem:[#allocation5 + $0x8] ss:$0 sm:$0xff] }
  0x3a   : > { %p1161_p4 = pnand %p1160_p1, %p1309_p3  ;;  %p1166_p2 = por %p1165_p9, %p1164_p11 }
  0x3b   : > { %205 = vmatpush.msra.mxu0 %v192_v6  ;;  %429 = vmatpush.msra.mxu1 %v407_v46 }
  0x3c   : > { %p1162_p8 = pneg %p1161_p4 }
  0x3d   : > { %206 = vmatpush.msra.mxu0 %v191_v7  ;;  %430 = vmatpush.msra.mxu1 %v406_v47 }
  0x3e   : > { %p1167_p10 = pnand %p1166_p2, %p1162_p8 }
  0x3f   : > { %207 = vmatpush.msra.mxu0 %v190_v8  ;;  %431 = vmatpush.msra.mxu1 %v405_v48  ;;  %v315_v8 = vperm.slane %v1363_v19, 1 }
  0x41   : > { %208 = vmatpush.msra.mxu0 %v189_v9  ;;  %432 = vmatpush.msra.mxu1 %v404_v50 }
  0x43   : > { %209 = vmatpush.msra.mxu0 %v188_v10  ;;  %433 = vmatpush.msra.mxu1 %v403_v53 }
  0x45   : > { %210 = vmatpush.msra.mxu0 %v187_v11  ;;  %434 = vmatpush.msra.mxu1 %v402_v54 }
  0x47   : > { %211 = vmatpush.msra.mxu0 %v186_v12 }
  0x49   : > { %212 = vmatpush.msra.mxu0 %v185_v13 }
  0x4b   : > { %213 = vmatpush.msra.mxu0 %v184_v14 }
  0x4d   : > { %214 = vmatpush.msra.mxu0 %v183_v15 }
  0x4e   : > { %215 = vmatmul.f32.vlgmr.msra.gmra.mxu0 %v1356_v16 }
  0x56   : > { %218 = vmatmul.f32.gmra.mxu0 %v1360_v17 }
  0xcb   : > { %v216_v18 = vpop.f32.mrf.mxu0 }
  0xcc   : > { %242 = vrot.lane.b32.xlu2 %v216_v18, %s1218_s15  ;;  %233 = vrot.lane.b32.xlu1 %v216_v18, %s1219_s20  ;;  %v307_v20 = vrot.slane %v216_v18, 7 }
  0xcd   : > { %227 = vrot.lane.b32.xlu0 %v216_v18, %s1220_s24 }
  0xce   : > { %v1367_v22 = vsel %vm259_vm0, 0.0, %v307_v20 }
  0xcf   : > { %v321_v25 = vmul.f32 %v320_v21, %v1367_v22  ;;  %v337_v27 = vmul.f32 %v336_v23, %v1367_v22 }
  0xd1   : > { %v327_v33 = vrot.slane %v321_v25, 1  ;;  %v343_v35 = vrot.slane %v337_v27, 2 }
  0xd3   : > { %v219_v24 = vpop.f32.mrf.mxu0 }
  0xd4   : > { %v308_v26 = vrot.slane %v219_v24, 7  ;;  %244 = vrot.lane.b32.xlu2 %v219_v24, %s1218_s15  ;;  %235 = vrot.lane.b32.xlu1 %v219_v24, %s1219_s20 }
  0xd5   : > { %229 = vrot.lane.b32.xlu0 %v219_v24, %s1220_s24 }
  0xd6   : > { %v1373_v28 = vsel %vm259_vm0, %v307_v20, %v308_v26  ;;  %v314_v29 = vsel %vm259_vm0, %v308_v26, 0.0 }
  0xd7   : > { %v322_v30 = vmul.f32 %v320_v21, %v1373_v28  ;;  %v323_v31 = vmul.f32 %v320_v21, %v314_v29  ;;  %v338_v32 = vmul.f32 %v336_v23, %v1373_v28  ;;  %v339_v34 = vmul.f32 %v336_v23, %v314_v29 }
  0xd9   : > { %v328_v36 = vrot.slane %v322_v30, 1  ;;  %v330_v37 = vrot.slane %v323_v31, 1  ;;  %v344_v38 = vrot.slane %v338_v32, 2  ;;  %v346_v39 = vrot.slane %v339_v34, 2 }
  0xdb   : > { %v1379_v40 = vsel %vm280_vm1, %v328_v36, %v330_v37  ;;  %v1382_v41 = vsel %vm280_vm1, %v327_v33, %v328_v36  ;;  %v1385_v42 = vsel %vm297_vm2, %v343_v35, %v344_v38  ;;  %v1388_v43 = vsel %vm297_vm2, %v344_v38, %v346_v39 }
  0xdc   : > { %250 = vrot.lane.b32.xlu1 %v219_v24, %s1221_s25  ;;  %v367_v35 = vperm.slane %v1363_v19, 5  ;;  %v316_v37 = vmul.f32 %v315_v8, %v1367_v22  ;;  %v317_v38 = vmul.f32 %v315_v8, %v1373_v28 }
  0xdd   : > { %248 = vrot.lane.b32.xlu0 %v216_v18, %s1221_s25 }
 0x126   : > { %v243_v56 = vpop.permute.xlu2 %242 }
 0x12e   : > { %v245_v10 = vpop.permute.xlu2 %244 }
 0x13e   : > { %v234_v49 = vpop.permute.xlu1 %233 }
 0x13f   : > { %v228_v51 = vpop.permute.xlu0 %227 }
 0x140   : > { %v240_v52 = vsel %vm239_vm3, %v228_v51, %v234_v49  ;;  %v362_v51 = vperm.slane %v1363_v19, 2 }
 0x141   : > { %v260_v55 = vrot.slane %v240_v52, 7 }
 0x143   : > { %v266_v59 = vsel %vm259_vm0, 0.0, %v260_v55 }
 0x144   : > { %v274_v0 = vmul.f32 %v273_v57, %v266_v59  ;;  %v291_v4 = vmul.f32 %v290_v61, %v266_v59  ;;  %v269_v18 = vmul.f32 %v268_v1, %v266_v59 }
 0x146   : > { %v236_v58 = vpop.permute.xlu1 %235  ;;  %v281_v11 = vrot.slane %v274_v0, 1  ;;  %v298_v25 = vrot.slane %v291_v4, 2  ;;  %v1075_v4 = vld [vmem:[#allocation5 + $0x10] ss:$0 sm:$0xff] }
 0x147   : > { %v230_v60 = vpop.permute.xlu0 %229 }
 0x148   : > { %v241_v62 = vsel %vm239_vm3, %v230_v60, %v236_v58 }
 0x149   : > { %v261_v63 = vrot.slane %v241_v62, 7 }
 0x14b   : > { %v262_v2 = vsel %vm259_vm0, %v260_v55, %v261_v63  ;;  %v267_v3 = vsel %vm259_vm0, %v261_v63, 0.0 }
 0x14c   : > { %v275_v5 = vmul.f32 %v273_v57, %v262_v2  ;;  %v276_v6 = vmul.f32 %v273_v57, %v267_v3  ;;  %v292_v7 = vmul.f32 %v290_v61, %v262_v2  ;;  %v293_v9 = vmul.f32 %v290_v61, %v267_v3 }
 0x14d   : > { %v270_v20 = vmul.f32 %v268_v1, %v262_v2 }
 0x14e   : > { %v282_v12 = vrot.slane %v275_v5, 1  ;;  %v284_v13 = vrot.slane %v276_v6, 1  ;;  %v299_v14 = vrot.slane %v292_v7, 2  ;;  %v251_v15 = vpop.permute.xlu1 %250  ;;  %v301_v21 = vrot.slane %v293_v9, 2 }
 0x14f   : > { %v256_v23 = vsel %vm254_vm4, %v245_v10, %v251_v15  ;;  %v249_v24 = vpop.permute.xlu0 %248 }
 0x150   : > { %v283_v26 = vsel %vm280_vm1, %v281_v11, %v282_v12  ;;  %v285_v27 = vsel %vm280_vm1, %v282_v12, %v284_v13  ;;  %v355_v29 = vrot.slane %v256_v23, 7  ;;  %v255_v32 = vsel %vm254_vm4, %v243_v56, %v249_v24  ;;  %v1076_v12 = vld [vmem:[#allocation5 + $0x88] ss:$0 sm:$0xff] }
 0x151   : > { %v288_v30 = vadd.f32 %v283_v26, %v269_v18  ;;  %v289_v31 = vadd.f32 %v285_v27, %v270_v20  ;;  %v300_v33 = vsel %vm297_vm2, %v298_v25, %v299_v14  ;;  %v302_v34 = vsel %vm297_vm2, %v299_v14, %v301_v21  ;;  %v1422_v18 = vld [vmem:[#allocation5 + $0x18] sm:$0xff] }
 0x152   : > { %v354_v36 = vrot.slane %v255_v32, 7  ;;  %v361_v49 = vsel %vm259_vm0, %v355_v29, 0.0  ;;  %v521_v23 = vperm.slane %v1422_v18, 4  ;;  %v537_v26 = vperm.slane %v1422_v18, 7 }
 0x153   : > { %v305_v39 = vadd.f32 %v300_v33, %v288_v30  ;;  %v306_v44 = vadd.f32 %v302_v34, %v289_v31  ;;  %v370_v56 = vmul.f32 %v367_v35, %v361_v49  ;;  %v386_v2 = vmul.f32 %v1074_v45, %v361_v49 }
 0x154   : > { %v356_v46 = vsel %vm259_vm0, %v354_v36, %v355_v29  ;;  %v360_v47 = vsel %vm259_vm0, 0.0, %v354_v36 }
 0x155   : > { %v319_v48 = vadd.f32 %v317_v38, %v306_v44  ;;  %v318_v50 = vadd.f32 %v316_v37, %v305_v39  ;;  %v368_v52 = vmul.f32 %v367_v35, %v360_v47  ;;  %v369_v53 = vmul.f32 %v367_v35, %v356_v46 }
 0x156   : > { %v384_v22 = vmul.f32 %v1074_v45, %v360_v47  ;;  %v385_v55 = vmul.f32 %v1074_v45, %v356_v46  ;;  %v363_v60 = vmul.f32 %v362_v51, %v360_v47  ;;  %v364_v0 = vmul.f32 %v362_v51, %v356_v46 }
 0x157   : > { %v334_v54 = vadd.f32 %v1382_v41, %v318_v50  ;;  %v335_v28 = vadd.f32 %v1379_v40, %v319_v48  ;;  %v374_v57 = vrot.slane %v368_v52, 1  ;;  %v375_v58 = vrot.slane %v369_v53, 1  ;;  %v618_v52 = vld [vmem:[#allocation5 + $0x108] sm:$0xff]  ;;  %v617_v53 = vld [vmem:[#allocation5 + $0x100] sm:$0xff] }
 0x158   : > { %v390_v62 = vrot.slane %v384_v22, 2  ;;  %v391_v63 = vrot.slane %v385_v55, 2  ;;  %v377_v1 = vrot.slane %v370_v56, 1  ;;  %v393_v7 = vrot.slane %v386_v2, 2  ;;  %621 = vmatpush.msra.mxu2 %v618_v52  ;;  %v615_v22 = vld [vmem:[#allocation5 + $0xf0] sm:$0xff]  ;;  %v614_v55 = vld [vmem:[#allocation5 + $0xe8] sm:$0xff] }
 0x159   : > { %v350_v59 = vadd.f32 %v1385_v42, %v334_v54  ;;  %v351_v61 = vadd.f32 %v1388_v43, %v335_v28  ;;  %v376_v41 = vsel %vm280_vm1, %v374_v57, %v375_v58  ;;  %v616_v54 = vld [vmem:[#allocation5 + $0xf8] sm:$0xff]  ;;  %v613_v28 = vld [vmem:[#allocation5 + $0xe0] sm:$0xff]  ;;  %v611_v57 = vld [vmem:[#allocation5 + $0xd0] sm:$0xff] }
 0x15a   : > { %v392_v40 = vsel %vm297_vm2, %v390_v62, %v391_v63  ;;  %v378_v42 = vsel %vm280_vm1, %v375_v58, %v377_v1  ;;  %v394_v9 = vsel %vm297_vm2, %v391_v63, %v393_v7  ;;  %622 = vmatpush.msra.mxu2 %v617_v53  ;;  %v612_v56 = vld [vmem:[#allocation5 + $0xd8] sm:$0xff]  ;;  %v610_v58 = vld [vmem:[#allocation5 + $0xc8] sm:$0xff]  ;;  %v605_v63 = vld [vmem:[#allocation5 + $0xa0] sm:$0xff] }
 0x15b   : > { %v365_v19 = vadd.f32 %v363_v60, %v350_v59  ;;  %v366_v5 = vadd.f32 %v364_v0, %v351_v61  ;;  %v609_v59 = vld [vmem:[#allocation5 + $0xc0] sm:$0xff]  ;;  %v608_v60 = vld [vmem:[#allocation5 + $0xb8] sm:$0xff]  ;;  %v607_v61 = vld [vmem:[#allocation5 + $0xb0] sm:$0xff] }
 0x15c   : > { %623 = vmatpush.msra.mxu2 %v616_v54  ;;  %v606_v62 = vld [vmem:[#allocation5 + $0xa8] sm:$0xff]  ;;  %v603_v1 = vld [vmem:[#allocation5 + $0x90] sm:$0xff] }
 0x15d   : > { %v381_v3 = vadd.f32 %v376_v41, %v365_v19  ;;  %v382_v43 = vadd.f32 %v378_v42, %v366_v5  ;;  %v604_v19 = vld [vmem:[#allocation5 + $0x98] sm:$0xff]  ;;  %v476_v41 = vperm.slane %v1422_v18, 3  ;;  %v471_v42 = vperm.slane %v1422_v18, 0 }
 0x15e   : > { %624 = vmatpush.msra.mxu2 %v615_v22  ;;  %v1077_v22 = vld [vmem:[#allocation5 + $0x20] ss:$0 sm:$0xff] }
 0x15f   : > { %v397_v6 = vadd.f32 %v392_v40, %v381_v3  ;;  %v398_v10 = vadd.f32 %v394_v9, %v382_v43 }
 0x160   : > { %625 = vmatpush.msra.mxu2 %v614_v55 }
 0x161   : > { %v400_v8 = vadd.f32 %v1075_v4, %v397_v6  ;;  %v401_v11 = vadd.f32 %v1075_v4, %v398_v10  ;;  %v492_v4 = vperm.slane %v1422_v18, 6 }
 0x162   : > { %626 = vmatpush.msra.mxu2 %v613_v28 }
 0x163   : > { %999 = vmatmul.msk.f32.vlgmr.msra.gmra.mxu1 %vm412_vm5, %v400_v8 }
 0x164   : > { %627 = vmatpush.msra.mxu2 %v612_v56  ;;  %v563_v56 = vperm.slane %v1422_v18, 2 }
 0x166   : > { %628 = vmatpush.msra.mxu2 %v611_v57 }
 0x168   : > { %629 = vmatpush.msra.mxu2 %v610_v58 }
 0x16a   : > { %630 = vmatpush.msra.mxu2 %v609_v59 }
 0x16b   : > { %1000 = vmatmul.msk.f32.gmra.mxu1 %vm412_vm5, %v401_v11 }
 0x16c   : > { %631 = vmatpush.msra.mxu2 %v608_v60 }
 0x16e   : > { %632 = vmatpush.msra.mxu2 %v607_v61 }
 0x170   : > { %633 = vmatpush.msra.mxu2 %v606_v62 }
 0x172   : > { %634 = vmatpush.msra.mxu2 %v605_v63 }
 0x174   : > { %635 = vmatpush.msra.mxu2 %v604_v19 }
 0x176   : > { %636 = vmatpush.msra.mxu2 %v603_v1 }
 0x1e0   : > { %v436_v13 = vpop.f32.mrf.mxu1 }
 0x1e1   : > { %v437_v14 = vadd.f32 %v1076_v12, %v436_v13 }
 0x1e3   : > { %v442_v15 = vmax.f32 %v437_v14, 0.0  ;;  %v516_v14 = vperm.slane %v1422_v18, 1 }
 0x1e5   : > { %455 = vrot.lane.b32.xlu1 %v442_v15, %s1222_s8  ;;  %449 = vrot.lane.b32.xlu2 %v442_v15, %s1223_s17  ;;  %v508_v20 = vrot.slane %v442_v15, 7 }
 0x1e7   : > { %v1426_v25 = vsel %vm259_vm0, 0.0, %v508_v20 }
 0x1e8   : > { %v439_v21 = vpop.f32.mrf.mxu1  ;;  %v522_v29 = vmul.f32 %v521_v23, %v1426_v25  ;;  %v538_v31 = vmul.f32 %v537_v26, %v1426_v25 }
 0x1e9   : > { %v440_v24 = vadd.f32 %v1076_v12, %v439_v21 }
 0x1ea   : > { %v528_v37 = vrot.slane %v522_v29, 1  ;;  %v544_v39 = vrot.slane %v538_v31, 2 }
 0x1eb   : > { %v443_v27 = vmax.f32 %v440_v24, 0.0 }
 0x1ed   : > { %v509_v30 = vrot.slane %v443_v27, 7  ;;  %457 = vrot.lane.b32.xlu2 %v443_v27, %s1222_s8  ;;  %451 = vrot.lane.b32.xlu0 %v443_v27, %s1223_s17 }
 0x1ef   : > { %v1434_v32 = vsel %vm259_vm0, %v508_v20, %v509_v30  ;;  %v515_v33 = vsel %vm259_vm0, %v509_v30, 0.0 }
 0x1f0   : > { %v523_v34 = vmul.f32 %v521_v23, %v1434_v32  ;;  %v524_v35 = vmul.f32 %v521_v23, %v515_v33  ;;  %v539_v36 = vmul.f32 %v537_v26, %v1434_v32  ;;  %v540_v38 = vmul.f32 %v537_v26, %v515_v33 }
 0x1f1   : > { %v518_v52 = vmul.f32 %v516_v14, %v1434_v32 }
 0x1f2   : > { %v529_v44 = vrot.slane %v523_v34, 1  ;;  %v531_v45 = vrot.slane %v524_v35, 1  ;;  %v545_v46 = vrot.slane %v539_v36, 2  ;;  %v547_v47 = vrot.slane %v540_v38, 2 }
 0x1f4   : > { %v1440_v48 = vsel %vm280_vm1, %v528_v37, %v529_v44  ;;  %v1443_v49 = vsel %vm297_vm2, %v544_v39, %v545_v46  ;;  %v1446_v50 = vsel %vm280_vm1, %v529_v44, %v531_v45  ;;  %v1449_v51 = vsel %vm297_vm2, %v545_v46, %v547_v47 }
 0x1f5   : > { %v568_v44 = vperm.slane %v1422_v18, 5  ;;  %v517_v47 = vmul.f32 %v516_v14, %v1426_v25 }
 0x23f   : > { %v450_v0 = vpop.permute.xlu2 %449 }
 0x240   : > { %v463_v2 = vrot.slane %v450_v0, 7 }
 0x242   : > { %v469_v3 = vsel %vm259_vm0, 0.0, %v463_v2 }
 0x243   : > { %v477_v6 = vmul.f32 %v476_v41, %v469_v3  ;;  %v493_v9 = vmul.f32 %v492_v4, %v469_v3  ;;  %v472_v27 = vmul.f32 %v471_v42, %v469_v3 }
 0x245   : > { %v483_v21 = vrot.slane %v477_v6, 1  ;;  %v499_v33 = vrot.slane %v493_v9, 2  ;;  %v1078_v6 = vld [vmem:[#allocation5 + $0x28] ss:$0 sm:$0xff] }
 0x247   : > { %v458_v10 = vpop.permute.xlu2 %457 }
 0x248   : > { %v556_v29 = vrot.slane %v458_v10, 7 }
 0x24a   : > { %v562_v61 = vsel %vm259_vm0, %v556_v29, 0.0 }
 0x257   : > { %v456_v7 = vpop.permute.xlu1 %455 }
 0x258   : > { %v555_v15 = vrot.slane %v456_v7, 7 }
 0x25a   : > { %v557_v36 = vsel %vm259_vm0, %v555_v15, %v556_v29  ;;  %v561_v37 = vsel %vm259_vm0, 0.0, %v555_v15 }
 0x25b   : > { %v569_v55 = vmul.f32 %v568_v44, %v561_v37  ;;  %v570_v28 = vmul.f32 %v568_v44, %v557_v36  ;;  %v585_v59 = vmul.f32 %v1077_v22, %v561_v37  ;;  %v586_v60 = vmul.f32 %v1077_v22, %v557_v36 }
 0x25c   : > { %v564_v32 = vmul.f32 %v563_v56, %v561_v37  ;;  %v565_v3 = vmul.f32 %v563_v56, %v557_v36 }
 0x25d   : > { %v575_v25 = vrot.slane %v569_v55, 1  ;;  %v576_v0 = vrot.slane %v570_v28, 1  ;;  %v592_v18 = vrot.slane %v586_v60, 2  ;;  %v818_v60 = vld [vmem:[#allocation5 + $0x180] sm:$0xff] }
 0x25f   : > { %v452_v5 = vpop.permute.xlu0 %451 }
 0x260   : > { %v464_v40 = vrot.slane %v452_v5, 7  ;;  %v577_v5 = vsel %vm280_vm1, %v575_v25, %v576_v0  ;;  %v863_v25 = vld [vmem:[#allocation5 + $0x298] sm:$0xff] }
 0x261   : > { %864 = vmatpush.msrb.mxu1 %v863_v25 }
 0x262   : > { %v465_v8 = vsel %vm259_vm0, %v463_v2, %v464_v40  ;;  %v470_v43 = vsel %vm259_vm0, %v464_v40, 0.0  ;;  %v571_v2 = vmul.f32 %v568_v44, %v562_v61 }
 0x263   : > { %v478_v11 = vmul.f32 %v476_v41, %v465_v8  ;;  %v479_v12 = vmul.f32 %v476_v41, %v470_v43  ;;  %v494_v13 = vmul.f32 %v492_v4, %v465_v8  ;;  %v495_v20 = vmul.f32 %v492_v4, %v470_v43 }
 0x264   : > { %v473_v30 = vmul.f32 %v471_v42, %v465_v8  ;;  %v591_v41 = vrot.slane %v585_v59, 2  ;;  %v587_v42 = vmul.f32 %v1077_v22, %v562_v61  ;;  %v819_v59 = vld [vmem:[#allocation5 + $0x188] sm:$0xff]  ;;  %v817_v61 = vld [vmem:[#allocation5 + $0x178] sm:$0xff] }
 0x265   : > { %v484_v23 = vrot.slane %v478_v11, 1  ;;  %v486_v24 = vrot.slane %v479_v12, 1  ;;  %v500_v26 = vrot.slane %v494_v13, 2  ;;  %v502_v31 = vrot.slane %v495_v20, 2  ;;  %v1079_v13 = vld [vmem:[#allocation5 + $0x110] ss:$0 sm:$0xff] }
 0x267   : > { %v485_v34 = vsel %vm280_vm1, %v483_v21, %v484_v23  ;;  %v487_v35 = vsel %vm280_vm1, %v484_v23, %v486_v24  ;;  %v501_v45 = vsel %vm297_vm2, %v499_v33, %v500_v26  ;;  %v503_v46 = vsel %vm297_vm2, %v500_v26, %v502_v31  ;;  %v1479_v21 = vld [vmem:[#allocation5 + $0x30] sm:$0xff] }
 0x268   : > { %v490_v38 = vadd.f32 %v485_v34, %v472_v27  ;;  %v491_v39 = vadd.f32 %v487_v35, %v473_v30  ;;  %v723_v26 = vperm.slane %v1479_v21, 4  ;;  %v739_v30 = vperm.slane %v1479_v21, 7 }
 0x26a   : > { %v506_v53 = vadd.f32 %v501_v45, %v490_v38  ;;  %v507_v54 = vadd.f32 %v503_v46, %v491_v39 }
 0x26c   : > { %v520_v57 = vadd.f32 %v518_v52, %v507_v54  ;;  %v519_v58 = vadd.f32 %v517_v47, %v506_v53 }
 0x26e   : > { %v535_v62 = vadd.f32 %v1440_v48, %v519_v58  ;;  %v536_v63 = vadd.f32 %v1446_v50, %v520_v57  ;;  %v578_v48 = vrot.slane %v571_v2, 1  ;;  %v593_v50 = vsel %vm297_vm2, %v591_v41, %v592_v18  ;;  %v820_v58 = vld [vmem:[#allocation5 + $0x190] sm:$0xff]  ;;  %v860_v41 = vld [vmem:[#allocation5 + $0x280] sm:$0xff] }
 0x26f   : > { %823 = vmatpush.msra.mxu3 %v820_v58  ;;  %v812_v2 = vld [vmem:[#allocation5 + $0x150] sm:$0xff] }
 0x270   : > { %v551_v19 = vadd.f32 %v1443_v49, %v535_v62  ;;  %v552_v1 = vadd.f32 %v1449_v51, %v536_v63  ;;  %v579_v43 = vsel %vm280_vm1, %v576_v0, %v578_v48  ;;  %v594_v51 = vrot.slane %v587_v42, 2  ;;  %v816_v62 = vld [vmem:[#allocation5 + $0x170] sm:$0xff]  ;;  %v815_v63 = vld [vmem:[#allocation5 + $0x168] sm:$0xff]  ;;  %v814_v0 = vld [vmem:[#allocation5 + $0x160] sm:$0xff] }
 0x271   : > { %824 = vmatpush.msra.mxu3 %v819_v59  ;;  %v856_v48 = vld [vmem:[#allocation5 + $0x260] sm:$0xff]  ;;  %v807_v42 = vld [vmem:[#allocation5 + $0x128] sm:$0xff] }
 0x272   : > { %v566_v4 = vadd.f32 %v564_v32, %v551_v19  ;;  %v567_v7 = vadd.f32 %v565_v3, %v552_v1  ;;  %v595_v10 = vsel %vm297_vm2, %v592_v18, %v594_v51  ;;  %v862_v32 = vld [vmem:[#allocation5 + $0x290] sm:$0xff]  ;;  %v813_v19 = vld [vmem:[#allocation5 + $0x158] sm:$0xff]  ;;  %v861_v1 = vld [vmem:[#allocation5 + $0x288] sm:$0xff] }
 0x273   : > { %825 = vmatpush.msra.mxu3 %v818_v60  ;;  %865 = vmatpush.msrb.mxu1 %v862_v32  ;;  %v811_v18 = vld [vmem:[#allocation5 + $0x148] sm:$0xff]  ;;  %v859_v3 = vld [vmem:[#allocation5 + $0x278] sm:$0xff] }
 0x274   : > { %v582_v40 = vadd.f32 %v577_v5, %v566_v4  ;;  %v583_v9 = vadd.f32 %v579_v43, %v567_v7  ;;  %v810_v4 = vld [vmem:[#allocation5 + $0x140] sm:$0xff]  ;;  %v858_v5 = vld [vmem:[#allocation5 + $0x270] sm:$0xff]  ;;  %v853_v51 = vld [vmem:[#allocation5 + $0x248] sm:$0xff] }
 0x275   : > { %826 = vmatpush.msra.mxu3 %v817_v61  ;;  %866 = vmatpush.msrb.mxu1 %v861_v1  ;;  %v808_v7 = vld [vmem:[#allocation5 + $0x130] sm:$0xff] }
 0x276   : > { %v598_v8 = vadd.f32 %v593_v50, %v582_v40  ;;  %v599_v11 = vadd.f32 %v595_v10, %v583_v9  ;;  %v809_v40 = vld [vmem:[#allocation5 + $0x138] sm:$0xff]  ;;  %v854_v43 = vld [vmem:[#allocation5 + $0x250] sm:$0xff] }
 0x277   : > { %827 = vmatpush.msra.mxu3 %v816_v62  ;;  %867 = vmatpush.msrb.mxu1 %v860_v41  ;;  %v855_v50 = vld [vmem:[#allocation5 + $0x258] sm:$0xff]  ;;  %v770_v41 = vperm.slane %v1479_v21, 5 }
 0x278   : > { %v601_v49 = vadd.f32 %v1078_v6, %v598_v8  ;;  %v602_v12 = vadd.f32 %v1078_v6, %v599_v11  ;;  %v857_v6 = vld [vmem:[#allocation5 + $0x268] sm:$0xff]  ;;  %v806_v8 = vld [vmem:[#allocation5 + $0x120] sm:$0xff]  ;;  %v805_v9 = vld [vmem:[#allocation5 + $0x118] sm:$0xff] }
 0x279   : > { %828 = vmatpush.msra.mxu3 %v815_v63  ;;  %868 = vmatpush.msrb.mxu1 %v859_v3  ;;  %v852_v11 = vld [vmem:[#allocation5 + $0x240] sm:$0xff] }
 0x27a   : > { %637 = vmatmul.f32.vlgmr.msra.gmra.mxu2 %v601_v49 }
 0x27b   : > { %829 = vmatpush.msra.mxu3 %v814_v0  ;;  %869 = vmatpush.msrb.mxu1 %v858_v5 }
 0x27d   : > { %830 = vmatpush.msra.mxu3 %v813_v19  ;;  %870 = vmatpush.msrb.mxu1 %v857_v6  ;;  %v1080_v6 = vld [vmem:[#allocation5 + $0x38] ss:$0 sm:$0xff] }
 0x27f   : > { %831 = vmatpush.msra.mxu3 %v812_v2  ;;  %871 = vmatpush.msrb.mxu1 %v856_v48  ;;  %v765_v48 = vperm.slane %v1479_v21, 2 }
 0x281   : > { %832 = vmatpush.msra.mxu3 %v811_v18  ;;  %872 = vmatpush.msrb.mxu1 %v855_v50 }
 0x282   : > { %640 = vmatmul.f32.gmra.mxu2 %v602_v12  ;;  %v851_v12 = vld [vmem:[#allocation5 + $0x238] sm:$0xff] }
 0x283   : > { %833 = vmatpush.msra.mxu3 %v810_v4  ;;  %873 = vmatpush.msrb.mxu1 %v854_v43 }
 0x285   : > { %834 = vmatpush.msra.mxu3 %v809_v40  ;;  %874 = vmatpush.msrb.mxu1 %v853_v51 }
 0x287   : > { %835 = vmatpush.msra.mxu3 %v808_v7  ;;  %875 = vmatpush.msrb.mxu1 %v852_v11 }
 0x289   : > { %836 = vmatpush.msra.mxu3 %v807_v42  ;;  %876 = vmatpush.msrb.mxu1 %v851_v12 }
 0x28b   : > { %837 = vmatpush.msra.mxu3 %v806_v8 }
 0x28d   : > { %838 = vmatpush.msra.mxu3 %v805_v9 }
 0x2fd   : > { %v638_v14 = vpop.f32.mrf.mxu2 }
 0x2fe   : > { %v639_v15 = vadd.f32 %v1079_v13, %v638_v14 }
 0x300   : > { %v644_v20 = vmax.f32 %v639_v15, 0.0 }
 0x302   : > { %657 = vrot.lane.b32.xlu2 %v644_v20, %s1222_s8  ;;  %651 = vrot.lane.b32.xlu0 %v644_v20, %s1223_s17  ;;  %v710_v23 = vrot.slane %v644_v20, 7  ;;  %v850_v20 = vld [vmem:[#allocation5 + $0x230] sm:$0xff] }
 0x303   : > { %877 = vmatpush.msrb.mxu1 %v850_v20 }
 0x304   : > { %v1483_v29 = vsel %vm259_vm0, 0.0, %v710_v23 }
 0x305   : > { %v641_v24 = vpop.f32.mrf.mxu2  ;;  %v724_v33 = vmul.f32 %v723_v26, %v1483_v29  ;;  %v740_v35 = vmul.f32 %v739_v30, %v1483_v29 }
 0x306   : > { %v642_v27 = vadd.f32 %v1079_v13, %v641_v24  ;;  %v678_v13 = vperm.slane %v1479_v21, 3 }
 0x307   : > { %v730_v45 = vrot.slane %v724_v33, 1  ;;  %v746_v47 = vrot.slane %v740_v35, 2  ;;  %v848_v35 = vld [vmem:[#allocation5 + $0x220] sm:$0xff] }
 0x308   : > { %v645_v31 = vmax.f32 %v642_v27, 0.0 }
 0x30a   : > { %v711_v34 = vrot.slane %v645_v31, 7  ;;  %659 = vrot.lane.b32.xlu0 %v645_v31, %s1222_s8  ;;  %653 = vrot.lane.b32.xlu1 %v645_v31, %s1223_s17 }
 0x30c   : > { %v1491_v36 = vsel %vm259_vm0, %v710_v23, %v711_v34  ;;  %v717_v37 = vsel %vm259_vm0, %v711_v34, 0.0  ;;  %v694_v23 = vperm.slane %v1479_v21, 6  ;;  %v673_v34 = vperm.slane %v1479_v21, 0 }
 0x30d   : > { %v725_v38 = vmul.f32 %v723_v26, %v1491_v36  ;;  %v726_v39 = vmul.f32 %v723_v26, %v717_v37  ;;  %v741_v44 = vmul.f32 %v739_v30, %v1491_v36  ;;  %v742_v46 = vmul.f32 %v739_v30, %v717_v37  ;;  %v849_v26 = vld [vmem:[#allocation5 + $0x228] sm:$0xff] }
 0x30e   : > { %878 = vmatpush.msrb.mxu1 %v849_v26 }
 0x30f   : > { %v731_v52 = vrot.slane %v725_v38, 1  ;;  %v733_v53 = vrot.slane %v726_v39, 1  ;;  %v747_v54 = vrot.slane %v741_v44, 2  ;;  %v749_v22 = vrot.slane %v742_v46, 2 }
 0x310   : > { %879 = vmatpush.msrb.mxu1 %v848_v35 }
 0x311   : > { %v1497_v55 = vsel %vm280_vm1, %v730_v45, %v731_v52  ;;  %v1500_v28 = vsel %vm297_vm2, %v746_v47, %v747_v54  ;;  %v1503_v56 = vsel %vm280_vm1, %v731_v52, %v733_v53  ;;  %v1506_v57 = vsel %vm297_vm2, %v747_v54, %v749_v22  ;;  %880 = vmatmul.f32.vlgmr.msrb.gmra.mxu1 %v1356_v16 }
 0x312   : > { %v718_v45 = vperm.slane %v1479_v21, 1 }
 0x314   : > { %v719_v2 = vmul.f32 %v718_v45, %v1483_v29  ;;  %v720_v16 = vmul.f32 %v718_v45, %v1491_v36 }
 0x319   : > { %883 = vmatmul.f32.gmra.mxu1 %v1360_v17 }
 0x35c   : > { %v658_v37 = vpop.permute.xlu2 %657 }
 0x35d   : > { %v757_v58 = vrot.slane %v658_v37, 7 }
 0x35f   : > { %v763_v4 = vsel %vm259_vm0, 0.0, %v757_v58 }
 0x360   : > { %v771_v8 = vmul.f32 %v770_v41, %v763_v4  ;;  %v787_v36 = vmul.f32 %v1080_v6, %v763_v4  ;;  %v766_v11 = vmul.f32 %v765_v48, %v763_v4 }
 0x374   : > { %v652_v49 = vpop.permute.xlu0 %651 }
 0x375   : > { %v665_v10 = vrot.slane %v652_v49, 7 }
 0x377   : > { %v671_v14 = vsel %vm259_vm0, 0.0, %v665_v10 }
 0x378   : > { %v679_v27 = vmul.f32 %v678_v13, %v671_v14  ;;  %v695_v38 = vmul.f32 %v694_v23, %v671_v14  ;;  %v674_v59 = vmul.f32 %v673_v34, %v671_v14 }
 0x37a   : > { %v685_v52 = vrot.slane %v679_v27, 1  ;;  %v701_v62 = vrot.slane %v695_v38, 2  ;;  %v1081_v27 = vld [vmem:[#allocation5 + $0x40] ss:$0 sm:$0xff] }
 0x37c   : > { %v654_v15 = vpop.permute.xlu1 %653  ;;  %v660_v30 = vpop.permute.xlu0 %659 }
 0x37d   : > { %v666_v24 = vrot.slane %v654_v15, 7  ;;  %v758_v46 = vrot.slane %v660_v30, 7 }
 0x37f   : > { %v667_v31 = vsel %vm259_vm0, %v665_v10, %v666_v24  ;;  %v672_v33 = vsel %vm259_vm0, %v666_v24, 0.0  ;;  %v759_v32 = vsel %vm259_vm0, %v757_v58, %v758_v46  ;;  %v764_v42 = vsel %vm259_vm0, %v758_v46, 0.0 }
 0x380   : > { %v680_v39 = vmul.f32 %v678_v13, %v667_v31  ;;  %v681_v44 = vmul.f32 %v678_v13, %v672_v33  ;;  %v696_v47 = vmul.f32 %v694_v23, %v667_v31  ;;  %v697_v22 = vmul.f32 %v694_v23, %v672_v33 }
 0x381   : > { %v675_v60 = vmul.f32 %v673_v34, %v667_v31  ;;  %v772_v7 = vmul.f32 %v770_v41, %v759_v32  ;;  %v788_v43 = vmul.f32 %v1080_v6, %v759_v32  ;;  %v773_v51 = vmul.f32 %v770_v41, %v764_v42 }
 0x382   : > { %v686_v53 = vrot.slane %v680_v39, 1  ;;  %v688_v54 = vrot.slane %v681_v44, 1  ;;  %v702_v61 = vrot.slane %v696_v47, 2  ;;  %v704_v0 = vrot.slane %v697_v22, 2  ;;  %v1082_v39 = vld [vmem:[#allocation5 + $0x198] ss:$0 sm:$0xff] }
 0x383   : > { %v778_v10 = vrot.slane %v772_v7, 1  ;;  %v777_v13 = vrot.slane %v771_v8, 1  ;;  %v794_v14 = vrot.slane %v788_v43, 2  ;;  %v767_v15 = vmul.f32 %v765_v48, %v759_v32 }
 0x384   : > { %v687_v63 = vsel %vm280_vm1, %v685_v52, %v686_v53  ;;  %v689_v25 = vsel %vm280_vm1, %v686_v53, %v688_v54  ;;  %v703_v18 = vsel %vm297_vm2, %v701_v62, %v702_v61  ;;  %v705_v3 = vsel %vm297_vm2, %v702_v61, %v704_v0 }
 0x385   : > { %v692_v19 = vadd.f32 %v687_v63, %v674_v59  ;;  %v693_v1 = vadd.f32 %v689_v25, %v675_v60  ;;  %v793_v23 = vrot.slane %v787_v36, 2  ;;  %v780_v24 = vrot.slane %v773_v51, 1 }
 0x386   : > { %v789_v26 = vmul.f32 %v1080_v6, %v764_v42 }
 0x387   : > { %v708_v5 = vadd.f32 %v703_v18, %v692_v19  ;;  %v709_v40 = vadd.f32 %v705_v3, %v693_v1  ;;  %v795_v30 = vsel %vm297_vm2, %v793_v23, %v794_v14 }
 0x388   : > { %v796_v33 = vrot.slane %v789_v26, 2 }
 0x389   : > { %v722_v50 = vadd.f32 %v720_v16, %v709_v40  ;;  %v721_v29 = vadd.f32 %v719_v2, %v708_v5 }
 0x38a   : > { %v797_v35 = vsel %vm297_vm2, %v794_v14, %v796_v33 }
 0x38b   : > { %v737_v49 = vadd.f32 %v1497_v55, %v721_v29  ;;  %v738_v9 = vadd.f32 %v1503_v56, %v722_v50  ;;  %v779_v55 = vsel %vm280_vm1, %v777_v13, %v778_v10 }
 0x38d   : > { %v753_v12 = vadd.f32 %v1500_v28, %v737_v49  ;;  %v754_v21 = vadd.f32 %v1506_v57, %v738_v9  ;;  %v781_v28 = vsel %vm280_vm1, %v778_v10, %v780_v24 }
 0x38e   : > { %v881_v45 = vpop.f32.mrf.mxu1 }
 0x38f   : > { %v768_v20 = vadd.f32 %v766_v11, %v753_v12  ;;  %v769_v17 = vadd.f32 %v767_v15, %v754_v21 }
 0x391   : > { %v784_v56 = vadd.f32 %v779_v55, %v768_v20  ;;  %v785_v34 = vadd.f32 %v781_v28, %v769_v17 }
 0x393   : > { %v800_v31 = vadd.f32 %v795_v30, %v784_v56  ;;  %v801_v37 = vadd.f32 %v797_v35, %v785_v34 }
 0x395   : > { %v803_v57 = vadd.f32 %v1081_v27, %v800_v31  ;;  %v804_v38 = vadd.f32 %v1081_v27, %v801_v37 }
 0x396   : > { %v884_v22 = vpop.f32.mrf.mxu1 }
 0x397   : > { %839 = vmatmul.f32.vlgmr.msra.gmra.mxu3 %v803_v57 }
 0x39f   : > { %842 = vmatmul.f32.gmra.mxu3 %v804_v38 }
 0x41a   : > { %v840_v44 = vpop.f32.mrf.mxu3 }
 0x41b   : > { %v841_v46 = vadd.f32 %v1082_v39, %v840_v44 }
 0x41d   : > { %v846_v47 = vmax.f32 %v841_v46, 0.0 }
 0x41f   : > { %v882_v52 = vadd.f32 %v881_v45, %v846_v47 }
 0x421   : > { %887 = vst [vmem:[%s180_s19] sm:$0xff] %v882_v52 }
 0x422   : > { %v843_v53 = vpop.f32.mrf.mxu3 }
 0x423   : > { %v844_v54 = vadd.f32 %v1082_v39, %v843_v53 }
 0x425   : > { %v847_v58 = vmax.f32 %v844_v54, 0.0 }
 0x427   : > { %v885_v59 = vadd.f32 %v884_v22, %v847_v58 }
 0x429   : > { %888 = vst [vmem:[%s180_s19 + $0x8] sm:$0xff] %v885_v59 }
 0x42a   : > { %1170 = shalt.err (!%p1167_p10)
}
 0x42b   : > { %s1224_s30 = smov 128  }
 0x42c   : > { %1014 = dma.vmem_to_hbm [thread:$0]  (%p1309_p3), %s903_s27, 256, %s905_s3, %s890_s13, %s1224_s30, %s1224_s30, %s1223_s17  }
 0x42d PF: > { %s919_s24 = sand.u32 1, %s1201_s9   ;;  %p1580_p12 = scmp.ge.s32.totalorder %s1213_s12, 2 }
 0x42e   : > { %s920_s25 = scalar_lea.sflag [#allocation4], %s919_s24 }
 0x42f   : > { %p1025_p13 = pnand %p1580_p12, %p1275_p6 }
 0x431   : > { %p1026_p0 = pneg %p1025_p13 }
 0x433   : > { %1196 = dma.done.wait (%p1026_p0), %s920_s25, 256  }
 0x434   : > { %1198 = vsyncadd (%p1026_p0), %s920_s25, 4294967040  ;;  %p16_p5 = scmp.ge.s32.totalorder %s1293_s23, 4   ;;  %s1581_s9 = smov %s1205_s10 }
 0x435   : > { %s1582_s10 = smov %s1209_s11  ;;  %s1583_s11 = smov %s1305_s28 }
 0x436   : > { %s1584_s12 = smov %s1293_s23  ;;  %18 = sbr.rel (!%p16_p5) target bundleno = 6 (0x6), region = 77 }
 0x43b   :  { %926 = vsyncpa [#allocation3], 1 }
 0x43c   :  { %928 = vsyncpa [#allocation3 + $0x1], 1 }
 0x43d   :  { %929 = vsyncpa [#allocation6], 1 }
 0x43e   :  { %930 = vsyncpa [#allocation4], 1 }
 0x43f   :  { %932 = vsyncpa [#allocation4 + $0x1], 1 }

</bundles_post_ra>
